<compile_context>
chip_gen: v5e
topology: v5e:2x2
jax: 0.10.0
libtpu: 0.0.40
codegen_flags: <defaults>
</compile_context>

<pallas_src>
import jax
import jax.numpy as jnp
from jax.experimental import pallas as pl
from jax.experimental.pallas import tpu as pltpu


def _sigmoid(x):
    return 1.0 / (1.0 + jnp.exp(-x))


def _lstm_kernel(idx_ref, emb_ref, wih_ref, whh_ref, b_ref, wfc_ref, bfc_ref,
                 out_ref, h_ref, c_ref):
    t = pl.program_id(0)
    num_steps = pl.num_programs(0)
    num_layers, bsz, hidden = h_ref.shape
    vocab = emb_ref.shape[0]

    # Init recurrent state at the first time step.
    @pl.when(t == 0)
    def _():
        h_ref[...] = jnp.zeros_like(h_ref)
        c_ref[...] = jnp.zeros_like(c_ref)

    # --- Embedding: one-hot @ table on the MXU (padding_idx row is zero) ---
    idx = idx_ref[0]                                              # [B, 1] int32
    lane_ids = jax.lax.broadcasted_iota(jnp.int32, (bsz, vocab), 1)
    onehot = jnp.where(lane_ids == idx, 1.0, 0.0).astype(jnp.float32)
    x_t = jnp.dot(onehot, emb_ref[...],
                  preferred_element_type=jnp.float32)             # [B, H]

    # --- 3 stacked LSTM layers (PyTorch gate order: i, f, g, o) ---
    inp = x_t
    for layer in range(num_layers):
        h_prev = h_ref[layer]                                     # [B, H]
        c_prev = c_ref[layer]
        gates = (jnp.dot(inp, wih_ref[layer],
                         preferred_element_type=jnp.float32)
                 + jnp.dot(h_prev, whh_ref[layer],
                           preferred_element_type=jnp.float32)
                 + b_ref[layer])                                  # [B, 4H]
        i_g = _sigmoid(gates[:, 0 * hidden:1 * hidden])
        f_g = _sigmoid(gates[:, 1 * hidden:2 * hidden])
        g_g = jnp.tanh(gates[:, 2 * hidden:3 * hidden])
        o_g = _sigmoid(gates[:, 3 * hidden:4 * hidden])
        c_new = f_g * c_prev + i_g * g_g
        h_new = o_g * jnp.tanh(c_new)
        h_ref[layer] = h_new
        c_ref[layer] = c_new
        inp = h_new

    # --- Final step: out = fc(out[:, -1, :])  (fc padded to 128 lanes) ---
    @pl.when(t == num_steps - 1)
    def _():
        out_ref[...] = (jnp.dot(inp, wfc_ref[...],
                                preferred_element_type=jnp.float32)
                        + bfc_ref[...])


def rnn_forward(x_idx, emb, wih, whh, b, wfc, bfc):
    """x_idx: [B, T] int32 token ids. Returns [B, num_classes] float32."""
    B, T = x_idx.shape
    V, H = emb.shape
    L = wih.shape[0]
    G = 4 * H
    num_classes = wfc.shape[1]
    B_pad = max(8, ((B + 7) // 8) * 8)

    # Pad batch to 8 sublanes; padded rows use token 0 (zero embedding row).
    idx_pad = jnp.zeros((B_pad, T), jnp.int32).at[:B, :].set(x_idx)
    idx_tb1 = jnp.transpose(idx_pad, (1, 0))[:, :, None]          # [T, B_pad, 1]

    # Zero-pad fc to a lane-dense 128-wide output; sliced back after the call.
    wfc_pad = jnp.zeros((H, H), jnp.float32).at[:, :num_classes].set(wfc)
    bfc_pad = jnp.zeros((1, H), jnp.float32).at[0, :num_classes].set(bfc)

    out_pad = pl.pallas_call(
        _lstm_kernel,
        out_shape=jax.ShapeDtypeStruct((B_pad, H), jnp.float32),
        grid_spec=pltpu.PrefetchScalarGridSpec(
            num_scalar_prefetch=0,
            grid=(T,),
            in_specs=[
                pl.BlockSpec((1, B_pad, 1), lambda t: (t, 0, 0)),   # token ids
                pl.BlockSpec((V, H), lambda t: (0, 0)),             # embedding
                pl.BlockSpec((L, H, G), lambda t: (0, 0, 0)),       # W_ih (resident)
                pl.BlockSpec((L, H, G), lambda t: (0, 0, 0)),       # W_hh (resident)
                pl.BlockSpec((L, 1, G), lambda t: (0, 0, 0)),       # bias  (resident)
                pl.BlockSpec((H, H), lambda t: (0, 0)),             # fc W (padded)
                pl.BlockSpec((1, H), lambda t: (0, 0)),             # fc b (padded)
            ],
            out_specs=pl.BlockSpec((B_pad, H), lambda t: (0, 0)),
            scratch_shapes=[
                pltpu.VMEM((L, B_pad, H), jnp.float32),             # h state
                pltpu.VMEM((L, B_pad, H), jnp.float32),             # c state
            ],
        ),
        compiler_params=pltpu.CompilerParams(
            dimension_semantics=("arbitrary",),                     # time recurrence
        ),
    )(idx_tb1, emb, wih, whh, b, wfc_pad, bfc_pad)

    return out_pad[:B, :num_classes]


def rnn_reference(x_idx, emb, wih, whh, b, wfc, bfc):
    """Pure-JAX reference of the same forward pass."""
    B, T = x_idx.shape
    H = emb.shape[1]
    L = wih.shape[0]
    xe = emb[x_idx]                                               # [B, T, H]
    h = [jnp.zeros((B, H), jnp.float32) for _ in range(L)]
    c = [jnp.zeros((B, H), jnp.float32) for _ in range(L)]
    last = None
    for t in range(T):
        inp = xe[:, t, :]
        for l in range(L):
            gates = inp @ wih[l] + h[l] @ whh[l] + b[l]
            i_g = jax.nn.sigmoid(gates[:, 0 * H:1 * H])
            f_g = jax.nn.sigmoid(gates[:, 1 * H:2 * H])
            g_g = jnp.tanh(gates[:, 2 * H:3 * H])
            o_g = jax.nn.sigmoid(gates[:, 3 * H:4 * H])
            c[l] = f_g * c[l] + i_g * g_g
            h[l] = o_g * jnp.tanh(c[l])
            inp = h[l]
        last = inp
    return last @ wfc + bfc


if __name__ == "__main__":
    key = jax.random.PRNGKey(0)
    k = jax.random.split(key, 7)

    V, H, L, NUM_CLASSES = 128, 128, 3, 10
    B, T = 2, 8
    scale = 0.08

    emb = (jax.random.normal(k[0], (V, H), jnp.float32) * 0.1).at[0].set(0.0)
    wih = jax.random.normal(k[1], (L, H, 4 * H), jnp.float32) * scale
    whh = jax.random.normal(k[2], (L, H, 4 * H), jnp.float32) * scale
    b = jax.random.normal(k[3], (L, 1, 4 * H), jnp.float32) * scale
    wfc = jax.random.normal(k[4], (H, NUM_CLASSES), jnp.float32) * scale
    bfc = jax.random.normal(k[5], (NUM_CLASSES,), jnp.float32) * scale
    x = jax.random.randint(k[6], (B, T), 0, V, dtype=jnp.int32)

    out = rnn_forward(x, emb, wih, whh, b, wfc, bfc)
    jax.block_until_ready(out)

    ref = rnn_reference(x, emb, wih, whh, b, wfc, bfc)

    assert out.shape == (B, NUM_CLASSES), out.shape
    assert bool(jnp.all(jnp.isfinite(out)))
    max_err = float(jnp.max(jnp.abs(out - ref)))
    assert max_err < 5e-2, f"mismatch vs reference: max |diff| = {max_err}"

    print("KERNEL_OK")
</pallas_src>

<mosaic_0001>
module attributes {stable_mosaic.version = 11 : i64} {
  func.func @_lstm_kernel(%arg0: i32, %arg1: memref<1x8x1xi32, #tpu.memory_space<vmem>>, %arg2: memref<128x128xf32, #tpu.memory_space<vmem>>, %arg3: memref<3x128x512xf32, #tpu.memory_space<vmem>>, %arg4: memref<3x128x512xf32, #tpu.memory_space<vmem>>, %arg5: memref<3x1x512xf32, #tpu.memory_space<vmem>>, %arg6: memref<128x128xf32, #tpu.memory_space<vmem>>, %arg7: memref<1x128xf32, #tpu.memory_space<vmem>>, %arg8: memref<8x128xf32, #tpu.memory_space<vmem>>, %arg9: memref<3x8x128xf32, #tpu.memory_space<vmem>>, %arg10: memref<3x8x128xf32, #tpu.memory_space<vmem>>) attributes {dimension_semantics = [#tpu.dimension_semantics<arbitrary>], iteration_bounds = array<i64: 8>, scalar_prefetch = 0 : i64, scratch_operands = 2 : i64, tpu.core_type = #tpu.core_type<tc>, window_params = [{transform_indices = @transform_0, window_bounds = array<i64: 1, 8, 1>}, {pipeline_mode = #tpu.pipeline_mode<synchronous>, transform_indices = @transform_1, window_bounds = array<i64: 128, 128>}, {pipeline_mode = #tpu.pipeline_mode<synchronous>, transform_indices = @transform_2, window_bounds = array<i64: 3, 128, 512>}, {pipeline_mode = #tpu.pipeline_mode<synchronous>, transform_indices = @transform_3, window_bounds = array<i64: 3, 128, 512>}, {pipeline_mode = #tpu.pipeline_mode<synchronous>, transform_indices = @transform_4, window_bounds = array<i64: 3, 1, 512>}, {pipeline_mode = #tpu.pipeline_mode<synchronous>, transform_indices = @transform_5, window_bounds = array<i64: 128, 128>}, {pipeline_mode = #tpu.pipeline_mode<synchronous>, transform_indices = @transform_6, window_bounds = array<i64: 1, 128>}, {pipeline_mode = #tpu.pipeline_mode<synchronous>, transform_indices = @transform_7, window_bounds = array<i64: 8, 128>}]} {
    %c0_i32 = arith.constant 0 : i32
    %0 = arith.cmpi eq, %arg0, %c0_i32 : i32
    %1 = arith.extui %0 : i1 to i32
    %c0_i32_0 = arith.constant 0 : i32
    %2 = arith.cmpi ne, %1, %c0_i32_0 : i32
    scf.if %2 {
      %cst_102 = arith.constant 0.000000e+00 : f32
      %172 = vector.broadcast %cst_102 : f32 to vector<3x8x128xf32>
      %c0_103 = arith.constant 0 : index
      %c0_104 = arith.constant 0 : index
      %c0_105 = arith.constant 0 : index
      %173 = vector.load %arg9[%c0_103, %c0_104, %c0_105] : memref<3x8x128xf32, #tpu.memory_space<vmem>>, vector<3x8x128xf32>
      tpu.vector_store %arg9[%c0_103, %c0_104, %c0_105], %172 {strides = array<i32>} : memref<3x8x128xf32, #tpu.memory_space<vmem>>, vector<3x8x128xf32>,
      %cst_106 = arith.constant 0.000000e+00 : f32
      %174 = vector.broadcast %cst_106 : f32 to vector<3x8x128xf32>
      %c0_107 = arith.constant 0 : index
      %c0_108 = arith.constant 0 : index
      %c0_109 = arith.constant 0 : index
      %175 = vector.load %arg10[%c0_107, %c0_108, %c0_109] : memref<3x8x128xf32, #tpu.memory_space<vmem>>, vector<3x8x128xf32>
      tpu.vector_store %arg10[%c0_107, %c0_108, %c0_109], %174 {strides = array<i32>} : memref<3x8x128xf32, #tpu.memory_space<vmem>>, vector<3x8x128xf32>,
    } else {
    }
    %c0 = arith.constant 0 : index
    %c0_1 = arith.constant 0 : index
    %c0_2 = arith.constant 0 : index
    %3 = vector.load %arg1[%c0, %c0_1, %c0_2] : memref<1x8x1xi32, #tpu.memory_space<vmem>>, vector<1x8x1xi32>
    %4 = vector.shape_cast %3 : vector<1x8x1xi32> to vector<8x1xi32>
    %5 = tpu.iota {dimensions = array<i32: 1>} : vector<8x128xi32>
    %6 = vector.broadcast %4 : vector<8x1xi32> to vector<8x128xi32>
    %7 = arith.cmpi eq, %5, %6 : vector<8x128xi32>
    %cst = arith.constant 1.000000e+00 : f32
    %cst_3 = arith.constant 0.000000e+00 : f32
    %8 = vector.broadcast %cst : f32 to vector<8x128xf32>
    %9 = vector.broadcast %cst_3 : f32 to vector<8x128xf32>
    %10 = arith.select %7, %8, %9 : vector<8x128xi1>, vector<8x128xf32>
    %c0_4 = arith.constant 0 : index
    %c0_5 = arith.constant 0 : index
    %11 = vector.load %arg2[%c0_4, %c0_5] : memref<128x128xf32, #tpu.memory_space<vmem>>, vector<128x128xf32>
    %cst_6 = arith.constant dense<0.000000e+00> : vector<8x128xf32>
    %12 = tpu.matmul %10, %11, %cst_6 {dimension_numbers = #tpu.dot_dimension_numbers<[1], [0], [0], [1], [0, 0, 1, 1], [], []>} : vector<8x128xf32>, vector<128x128xf32>, vector<8x128xf32> -> vector<8x128xf32>
    %c0_7 = arith.constant 0 : index
    %c0_8 = arith.constant 0 : index
    %c0_9 = arith.constant 0 : index
    %13 = vector.load %arg9[%c0_7, %c0_8, %c0_9] : memref<3x8x128xf32, #tpu.memory_space<vmem>>, vector<1x8x128xf32>
    %14 = vector.shape_cast %13 : vector<1x8x128xf32> to vector<8x128xf32>
    %c0_10 = arith.constant 0 : index
    %c0_11 = arith.constant 0 : index
    %c0_12 = arith.constant 0 : index
    %15 = vector.load %arg10[%c0_10, %c0_11, %c0_12] : memref<3x8x128xf32, #tpu.memory_space<vmem>>, vector<1x8x128xf32>
    %16 = vector.shape_cast %15 : vector<1x8x128xf32> to vector<8x128xf32>
    %c0_13 = arith.constant 0 : index
    %c0_14 = arith.constant 0 : index
    %c0_15 = arith.constant 0 : index
    %17 = vector.load %arg3[%c0_13, %c0_14, %c0_15] : memref<3x128x512xf32, #tpu.memory_space<vmem>>, vector<1x128x512xf32>
    %18 = vector.shape_cast %17 : vector<1x128x512xf32> to vector<128x512xf32>
    %cst_16 = arith.constant dense<0.000000e+00> : vector<8x512xf32>
    %19 = tpu.matmul %12, %18, %cst_16 {dimension_numbers = #tpu.dot_dimension_numbers<[1], [0], [0], [1], [0, 0, 1, 1], [], []>} : vector<8x128xf32>, vector<128x512xf32>, vector<8x512xf32> -> vector<8x512xf32>
    %c0_17 = arith.constant 0 : index
    %c0_18 = arith.constant 0 : index
    %c0_19 = arith.constant 0 : index
    %20 = vector.load %arg4[%c0_17, %c0_18, %c0_19] : memref<3x128x512xf32, #tpu.memory_space<vmem>>, vector<1x128x512xf32>
    %21 = vector.shape_cast %20 : vector<1x128x512xf32> to vector<128x512xf32>
    %cst_20 = arith.constant dense<0.000000e+00> : vector<8x512xf32>
    %22 = tpu.matmul %14, %21, %cst_20 {dimension_numbers = #tpu.dot_dimension_numbers<[1], [0], [0], [1], [0, 0, 1, 1], [], []>} : vector<8x128xf32>, vector<128x512xf32>, vector<8x512xf32> -> vector<8x512xf32>
    %23 = arith.addf %19, %22 : vector<8x512xf32>
    %c0_21 = arith.constant 0 : index
    %c0_22 = arith.constant 0 : index
    %c0_23 = arith.constant 0 : index
    %24 = vector.load %arg5[%c0_21, %c0_22, %c0_23] : memref<3x1x512xf32, #tpu.memory_space<vmem>>, vector<1x1x512xf32>
    %25 = vector.shape_cast %24 : vector<1x1x512xf32> to vector<1x512xf32>
    %26 = vector.broadcast %25 : vector<1x512xf32> to vector<8x512xf32>
    %27 = arith.addf %23, %26 : vector<8x512xf32>
    %28 = vector.extract_strided_slice %27 {offsets = [0, 0], sizes = [8, 128], strides = [1, 1]} : vector<8x512xf32> to vector<8x128xf32>
    %cst_24 = arith.constant 0.000000e+00 : f32
    %29 = vector.broadcast %cst_24 : f32 to vector<8x128xf32>
    %30 = arith.subf %29, %28 : vector<8x128xf32>
    %31 = math.exp %30 : vector<8x128xf32>
    %cst_25 = arith.constant 1.000000e+00 : f32
    %32 = vector.broadcast %cst_25 : f32 to vector<8x128xf32>
    %33 = arith.addf %32, %31 : vector<8x128xf32>
    %cst_26 = arith.constant 1.000000e+00 : f32
    %34 = vector.broadcast %cst_26 : f32 to vector<8x128xf32>
    %35 = arith.divf %34, %33 : vector<8x128xf32>
    %36 = vector.extract_strided_slice %27 {offsets = [0, 128], sizes = [8, 128], strides = [1, 1]} : vector<8x512xf32> to vector<8x128xf32>
    %cst_27 = arith.constant 0.000000e+00 : f32
    %37 = vector.broadcast %cst_27 : f32 to vector<8x128xf32>
    %38 = arith.subf %37, %36 : vector<8x128xf32>
    %39 = math.exp %38 : vector<8x128xf32>
    %cst_28 = arith.constant 1.000000e+00 : f32
    %40 = vector.broadcast %cst_28 : f32 to vector<8x128xf32>
    %41 = arith.addf %40, %39 : vector<8x128xf32>
    %cst_29 = arith.constant 1.000000e+00 : f32
    %42 = vector.broadcast %cst_29 : f32 to vector<8x128xf32>
    %43 = arith.divf %42, %41 : vector<8x128xf32>
    %44 = vector.extract_strided_slice %27 {offsets = [0, 256], sizes = [8, 128], strides = [1, 1]} : vector<8x512xf32> to vector<8x128xf32>
    %45 = math.tanh %44 : vector<8x128xf32>
    %46 = vector.extract_strided_slice %27 {offsets = [0, 384], sizes = [8, 128], strides = [1, 1]} : vector<8x512xf32> to vector<8x128xf32>
    %cst_30 = arith.constant 0.000000e+00 : f32
    %47 = vector.broadcast %cst_30 : f32 to vector<8x128xf32>
    %48 = arith.subf %47, %46 : vector<8x128xf32>
    %49 = math.exp %48 : vector<8x128xf32>
    %cst_31 = arith.constant 1.000000e+00 : f32
    %50 = vector.broadcast %cst_31 : f32 to vector<8x128xf32>
    %51 = arith.addf %50, %49 : vector<8x128xf32>
    %cst_32 = arith.constant 1.000000e+00 : f32
    %52 = vector.broadcast %cst_32 : f32 to vector<8x128xf32>
    %53 = arith.divf %52, %51 : vector<8x128xf32>
    %54 = arith.mulf %43, %16 : vector<8x128xf32>
    %55 = arith.mulf %35, %45 : vector<8x128xf32>
    %56 = arith.addf %54, %55 : vector<8x128xf32>
    %57 = math.tanh %56 : vector<8x128xf32>
    %58 = arith.mulf %53, %57 : vector<8x128xf32>
    %c0_33 = arith.constant 0 : index
    %c0_34 = arith.constant 0 : index
    %c0_35 = arith.constant 0 : index
    %59 = vector.load %arg9[%c0_33, %c0_34, %c0_35] : memref<3x8x128xf32, #tpu.memory_space<vmem>>, vector<1x8x128xf32>
    %60 = vector.shape_cast %59 : vector<1x8x128xf32> to vector<8x128xf32>
    %61 = vector.shape_cast %58 : vector<8x128xf32> to vector<1x8x128xf32>
    tpu.vector_store %arg9[%c0_33, %c0_34, %c0_35], %61 {strides = array<i32>} : memref<3x8x128xf32, #tpu.memory_space<vmem>>, vector<1x8x128xf32>,
    %c0_36 = arith.constant 0 : index
    %c0_37 = arith.constant 0 : index
    %c0_38 = arith.constant 0 : index
    %62 = vector.load %arg10[%c0_36, %c0_37, %c0_38] : memref<3x8x128xf32, #tpu.memory_space<vmem>>, vector<1x8x128xf32>
    %63 = vector.shape_cast %62 : vector<1x8x128xf32> to vector<8x128xf32>
    %64 = vector.shape_cast %56 : vector<8x128xf32> to vector<1x8x128xf32>
    tpu.vector_store %arg10[%c0_36, %c0_37, %c0_38], %64 {strides = array<i32>} : memref<3x8x128xf32, #tpu.memory_space<vmem>>, vector<1x8x128xf32>,
    %c1 = arith.constant 1 : index
    %c0_39 = arith.constant 0 : index
    %c0_40 = arith.constant 0 : index
    %65 = vector.load %arg9[%c1, %c0_39, %c0_40] : memref<3x8x128xf32, #tpu.memory_space<vmem>>, vector<1x8x128xf32>
    %66 = vector.shape_cast %65 : vector<1x8x128xf32> to vector<8x128xf32>
    %c1_41 = arith.constant 1 : index
    %c0_42 = arith.constant 0 : index
    %c0_43 = arith.constant 0 : index
    %67 = vector.load %arg10[%c1_41, %c0_42, %c0_43] : memref<3x8x128xf32, #tpu.memory_space<vmem>>, vector<1x8x128xf32>
    %68 = vector.shape_cast %67 : vector<1x8x128xf32> to vector<8x128xf32>
    %c1_44 = arith.constant 1 : index
    %c0_45 = arith.constant 0 : index
    %c0_46 = arith.constant 0 : index
    %69 = vector.load %arg3[%c1_44, %c0_45, %c0_46] : memref<3x128x512xf32, #tpu.memory_space<vmem>>, vector<1x128x512xf32>
    %70 = vector.shape_cast %69 : vector<1x128x512xf32> to vector<128x512xf32>
    %cst_47 = arith.constant dense<0.000000e+00> : vector<8x512xf32>
    %71 = tpu.matmul %58, %70, %cst_47 {dimension_numbers = #tpu.dot_dimension_numbers<[1], [0], [0], [1], [0, 0, 1, 1], [], []>} : vector<8x128xf32>, vector<128x512xf32>, vector<8x512xf32> -> vector<8x512xf32>
    %c1_48 = arith.constant 1 : index
    %c0_49 = arith.constant 0 : index
    %c0_50 = arith.constant 0 : index
    %72 = vector.load %arg4[%c1_48, %c0_49, %c0_50] : memref<3x128x512xf32, #tpu.memory_space<vmem>>, vector<1x128x512xf32>
    %73 = vector.shape_cast %72 : vector<1x128x512xf32> to vector<128x512xf32>
    %cst_51 = arith.constant dense<0.000000e+00> : vector<8x512xf32>
    %74 = tpu.matmul %66, %73, %cst_51 {dimension_numbers = #tpu.dot_dimension_numbers<[1], [0], [0], [1], [0, 0, 1, 1], [], []>} : vector<8x128xf32>, vector<128x512xf32>, vector<8x512xf32> -> vector<8x512xf32>
    %75 = arith.addf %71, %74 : vector<8x512xf32>
    %c1_52 = arith.constant 1 : index
    %c0_53 = arith.constant 0 : index
    %c0_54 = arith.constant 0 : index
    %76 = vector.load %arg5[%c1_52, %c0_53, %c0_54] : memref<3x1x512xf32, #tpu.memory_space<vmem>>, vector<1x1x512xf32>
    %77 = vector.shape_cast %76 : vector<1x1x512xf32> to vector<1x512xf32>
    %78 = vector.broadcast %77 : vector<1x512xf32> to vector<8x512xf32>
    %79 = arith.addf %75, %78 : vector<8x512xf32>
    %80 = vector.extract_strided_slice %79 {offsets = [0, 0], sizes = [8, 128], strides = [1, 1]} : vector<8x512xf32> to vector<8x128xf32>
    %cst_55 = arith.constant 0.000000e+00 : f32
    %81 = vector.broadcast %cst_55 : f32 to vector<8x128xf32>
    %82 = arith.subf %81, %80 : vector<8x128xf32>
    %83 = math.exp %82 : vector<8x128xf32>
    %cst_56 = arith.constant 1.000000e+00 : f32
    %84 = vector.broadcast %cst_56 : f32 to vector<8x128xf32>
    %85 = arith.addf %84, %83 : vector<8x128xf32>
    %cst_57 = arith.constant 1.000000e+00 : f32
    %86 = vector.broadcast %cst_57 : f32 to vector<8x128xf32>
    %87 = arith.divf %86, %85 : vector<8x128xf32>
    %88 = vector.extract_strided_slice %79 {offsets = [0, 128], sizes = [8, 128], strides = [1, 1]} : vector<8x512xf32> to vector<8x128xf32>
    %cst_58 = arith.constant 0.000000e+00 : f32
    %89 = vector.broadcast %cst_58 : f32 to vector<8x128xf32>
    %90 = arith.subf %89, %88 : vector<8x128xf32>
    %91 = math.exp %90 : vector<8x128xf32>
    %cst_59 = arith.constant 1.000000e+00 : f32
    %92 = vector.broadcast %cst_59 : f32 to vector<8x128xf32>
    %93 = arith.addf %92, %91 : vector<8x128xf32>
    %cst_60 = arith.constant 1.000000e+00 : f32
    %94 = vector.broadcast %cst_60 : f32 to vector<8x128xf32>
    %95 = arith.divf %94, %93 : vector<8x128xf32>
    %96 = vector.extract_strided_slice %79 {offsets = [0, 256], sizes = [8, 128], strides = [1, 1]} : vector<8x512xf32> to vector<8x128xf32>
    %97 = math.tanh %96 : vector<8x128xf32>
    %98 = vector.extract_strided_slice %79 {offsets = [0, 384], sizes = [8, 128], strides = [1, 1]} : vector<8x512xf32> to vector<8x128xf32>
    %cst_61 = arith.constant 0.000000e+00 : f32
    %99 = vector.broadcast %cst_61 : f32 to vector<8x128xf32>
    %100 = arith.subf %99, %98 : vector<8x128xf32>
    %101 = math.exp %100 : vector<8x128xf32>
    %cst_62 = arith.constant 1.000000e+00 : f32
    %102 = vector.broadcast %cst_62 : f32 to vector<8x128xf32>
    %103 = arith.addf %102, %101 : vector<8x128xf32>
    %cst_63 = arith.constant 1.000000e+00 : f32
    %104 = vector.broadcast %cst_63 : f32 to vector<8x128xf32>
    %105 = arith.divf %104, %103 : vector<8x128xf32>
    %106 = arith.mulf %95, %68 : vector<8x128xf32>
    %107 = arith.mulf %87, %97 : vector<8x128xf32>
    %108 = arith.addf %106, %107 : vector<8x128xf32>
    %109 = math.tanh %108 : vector<8x128xf32>
    %110 = arith.mulf %105, %109 : vector<8x128xf32>
    %c1_64 = arith.constant 1 : index
    %c0_65 = arith.constant 0 : index
    %c0_66 = arith.constant 0 : index
    %111 = vector.load %arg9[%c1_64, %c0_65, %c0_66] : memref<3x8x128xf32, #tpu.memory_space<vmem>>, vector<1x8x128xf32>
    %112 = vector.shape_cast %111 : vector<1x8x128xf32> to vector<8x128xf32>
    %113 = vector.shape_cast %110 : vector<8x128xf32> to vector<1x8x128xf32>
    tpu.vector_store %arg9[%c1_64, %c0_65, %c0_66], %113 {strides = array<i32>} : memref<3x8x128xf32, #tpu.memory_space<vmem>>, vector<1x8x128xf32>,
    %c1_67 = arith.constant 1 : index
    %c0_68 = arith.constant 0 : index
    %c0_69 = arith.constant 0 : index
    %114 = vector.load %arg10[%c1_67, %c0_68, %c0_69] : memref<3x8x128xf32, #tpu.memory_space<vmem>>, vector<1x8x128xf32>
    %115 = vector.shape_cast %114 : vector<1x8x128xf32> to vector<8x128xf32>
    %116 = vector.shape_cast %108 : vector<8x128xf32> to vector<1x8x128xf32>
    tpu.vector_store %arg10[%c1_67, %c0_68, %c0_69], %116 {strides = array<i32>} : memref<3x8x128xf32, #tpu.memory_space<vmem>>, vector<1x8x128xf32>,
    %c2 = arith.constant 2 : index
    %c0_70 = arith.constant 0 : index
    %c0_71 = arith.constant 0 : index
    %117 = vector.load %arg9[%c2, %c0_70, %c0_71] : memref<3x8x128xf32, #tpu.memory_space<vmem>>, vector<1x8x128xf32>
    %118 = vector.shape_cast %117 : vector<1x8x128xf32> to vector<8x128xf32>
    %c2_72 = arith.constant 2 : index
    %c0_73 = arith.constant 0 : index
    %c0_74 = arith.constant 0 : index
    %119 = vector.load %arg10[%c2_72, %c0_73, %c0_74] : memref<3x8x128xf32, #tpu.memory_space<vmem>>, vector<1x8x128xf32>
    %120 = vector.shape_cast %119 : vector<1x8x128xf32> to vector<8x128xf32>
    %c2_75 = arith.constant 2 : index
    %c0_76 = arith.constant 0 : index
    %c0_77 = arith.constant 0 : index
    %121 = vector.load %arg3[%c2_75, %c0_76, %c0_77] : memref<3x128x512xf32, #tpu.memory_space<vmem>>, vector<1x128x512xf32>
    %122 = vector.shape_cast %121 : vector<1x128x512xf32> to vector<128x512xf32>
    %cst_78 = arith.constant dense<0.000000e+00> : vector<8x512xf32>
    %123 = tpu.matmul %110, %122, %cst_78 {dimension_numbers = #tpu.dot_dimension_numbers<[1], [0], [0], [1], [0, 0, 1, 1], [], []>} : vector<8x128xf32>, vector<128x512xf32>, vector<8x512xf32> -> vector<8x512xf32>
    %c2_79 = arith.constant 2 : index
    %c0_80 = arith.constant 0 : index
    %c0_81 = arith.constant 0 : index
    %124 = vector.load %arg4[%c2_79, %c0_80, %c0_81] : memref<3x128x512xf32, #tpu.memory_space<vmem>>, vector<1x128x512xf32>
    %125 = vector.shape_cast %124 : vector<1x128x512xf32> to vector<128x512xf32>
    %cst_82 = arith.constant dense<0.000000e+00> : vector<8x512xf32>
    %126 = tpu.matmul %118, %125, %cst_82 {dimension_numbers = #tpu.dot_dimension_numbers<[1], [0], [0], [1], [0, 0, 1, 1], [], []>} : vector<8x128xf32>, vector<128x512xf32>, vector<8x512xf32> -> vector<8x512xf32>
    %127 = arith.addf %123, %126 : vector<8x512xf32>
    %c2_83 = arith.constant 2 : index
    %c0_84 = arith.constant 0 : index
    %c0_85 = arith.constant 0 : index
    %128 = vector.load %arg5[%c2_83, %c0_84, %c0_85] : memref<3x1x512xf32, #tpu.memory_space<vmem>>, vector<1x1x512xf32>
    %129 = vector.shape_cast %128 : vector<1x1x512xf32> to vector<1x512xf32>
    %130 = vector.broadcast %129 : vector<1x512xf32> to vector<8x512xf32>
    %131 = arith.addf %127, %130 : vector<8x512xf32>
    %132 = vector.extract_strided_slice %131 {offsets = [0, 0], sizes = [8, 128], strides = [1, 1]} : vector<8x512xf32> to vector<8x128xf32>
    %cst_86 = arith.constant 0.000000e+00 : f32
    %133 = vector.broadcast %cst_86 : f32 to vector<8x128xf32>
    %134 = arith.subf %133, %132 : vector<8x128xf32>
    %135 = math.exp %134 : vector<8x128xf32>
    %cst_87 = arith.constant 1.000000e+00 : f32
    %136 = vector.broadcast %cst_87 : f32 to vector<8x128xf32>
    %137 = arith.addf %136, %135 : vector<8x128xf32>
    %cst_88 = arith.constant 1.000000e+00 : f32
    %138 = vector.broadcast %cst_88 : f32 to vector<8x128xf32>
    %139 = arith.divf %138, %137 : vector<8x128xf32>
    %140 = vector.extract_strided_slice %131 {offsets = [0, 128], sizes = [8, 128], strides = [1, 1]} : vector<8x512xf32> to vector<8x128xf32>
    %cst_89 = arith.constant 0.000000e+00 : f32
    %141 = vector.broadcast %cst_89 : f32 to vector<8x128xf32>
    %142 = arith.subf %141, %140 : vector<8x128xf32>
    %143 = math.exp %142 : vector<8x128xf32>
    %cst_90 = arith.constant 1.000000e+00 : f32
    %144 = vector.broadcast %cst_90 : f32 to vector<8x128xf32>
    %145 = arith.addf %144, %143 : vector<8x128xf32>
    %cst_91 = arith.constant 1.000000e+00 : f32
    %146 = vector.broadcast %cst_91 : f32 to vector<8x128xf32>
    %147 = arith.divf %146, %145 : vector<8x128xf32>
    %148 = vector.extract_strided_slice %131 {offsets = [0, 256], sizes = [8, 128], strides = [1, 1]} : vector<8x512xf32> to vector<8x128xf32>
    %149 = math.tanh %148 : vector<8x128xf32>
    %150 = vector.extract_strided_slice %131 {offsets = [0, 384], sizes = [8, 128], strides = [1, 1]} : vector<8x512xf32> to vector<8x128xf32>
    %cst_92 = arith.constant 0.000000e+00 : f32
    %151 = vector.broadcast %cst_92 : f32 to vector<8x128xf32>
    %152 = arith.subf %151, %150 : vector<8x128xf32>
    %153 = math.exp %152 : vector<8x128xf32>
    %cst_93 = arith.constant 1.000000e+00 : f32
    %154 = vector.broadcast %cst_93 : f32 to vector<8x128xf32>
    %155 = arith.addf %154, %153 : vector<8x128xf32>
    %cst_94 = arith.constant 1.000000e+00 : f32
    %156 = vector.broadcast %cst_94 : f32 to vector<8x128xf32>
    %157 = arith.divf %156, %155 : vector<8x128xf32>
    %158 = arith.mulf %147, %120 : vector<8x128xf32>
    %159 = arith.mulf %139, %149 : vector<8x128xf32>
    %160 = arith.addf %158, %159 : vector<8x128xf32>
    %161 = math.tanh %160 : vector<8x128xf32>
    %162 = arith.mulf %157, %161 : vector<8x128xf32>
    %c2_95 = arith.constant 2 : index
    %c0_96 = arith.constant 0 : index
    %c0_97 = arith.constant 0 : index
    %163 = vector.load %arg9[%c2_95, %c0_96, %c0_97] : memref<3x8x128xf32, #tpu.memory_space<vmem>>, vector<1x8x128xf32>
    %164 = vector.shape_cast %163 : vector<1x8x128xf32> to vector<8x128xf32>
    %165 = vector.shape_cast %162 : vector<8x128xf32> to vector<1x8x128xf32>
    tpu.vector_store %arg9[%c2_95, %c0_96, %c0_97], %165 {strides = array<i32>} : memref<3x8x128xf32, #tpu.memory_space<vmem>>, vector<1x8x128xf32>,
    %c2_98 = arith.constant 2 : index
    %c0_99 = arith.constant 0 : index
    %c0_100 = arith.constant 0 : index
    %166 = vector.load %arg10[%c2_98, %c0_99, %c0_100] : memref<3x8x128xf32, #tpu.memory_space<vmem>>, vector<1x8x128xf32>
    %167 = vector.shape_cast %166 : vector<1x8x128xf32> to vector<8x128xf32>
    %168 = vector.shape_cast %160 : vector<8x128xf32> to vector<1x8x128xf32>
    tpu.vector_store %arg10[%c2_98, %c0_99, %c0_100], %168 {strides = array<i32>} : memref<3x8x128xf32, #tpu.memory_space<vmem>>, vector<1x8x128xf32>,
    %c7_i32 = arith.constant 7 : i32
    %169 = arith.cmpi eq, %arg0, %c7_i32 : i32
    %170 = arith.extui %169 : i1 to i32
    %c0_i32_101 = arith.constant 0 : i32
    %171 = arith.cmpi ne, %170, %c0_i32_101 : i32
    scf.if %171 {
      %c0_102 = arith.constant 0 : index
      %c0_103 = arith.constant 0 : index
      %172 = vector.load %arg6[%c0_102, %c0_103] : memref<128x128xf32, #tpu.memory_space<vmem>>, vector<128x128xf32>
      %cst_104 = arith.constant dense<0.000000e+00> : vector<8x128xf32>
      %173 = tpu.matmul %162, %172, %cst_104 {dimension_numbers = #tpu.dot_dimension_numbers<[1], [0], [0], [1], [0, 0, 1, 1], [], []>} : vector<8x128xf32>, vector<128x128xf32>, vector<8x128xf32> -> vector<8x128xf32>
      %c0_105 = arith.constant 0 : index
      %c0_106 = arith.constant 0 : index
      %174 = vector.load %arg7[%c0_105, %c0_106] : memref<1x128xf32, #tpu.memory_space<vmem>>, vector<1x128xf32>
      %175 = vector.broadcast %174 : vector<1x128xf32> to vector<8x128xf32>
      %176 = arith.addf %173, %175 : vector<8x128xf32>
      %c0_107 = arith.constant 0 : index
      %c0_108 = arith.constant 0 : index
      %177 = vector.load %arg8[%c0_107, %c0_108] : memref<8x128xf32, #tpu.memory_space<vmem>>, vector<8x128xf32>
      tpu.vector_store %arg8[%c0_107, %c0_108], %176 {strides = array<i32>} : memref<8x128xf32, #tpu.memory_space<vmem>>, vector<8x128xf32>,
    } else {
    }
    return
  }
  func.func @transform_0(%arg0: i32) -> (i32, i32, i32) {
    %c0_i32 = arith.constant 0 : i32
    %c0_i32_0 = arith.constant 0 : i32
    %c0_i32_1 = arith.constant 0 : i32
    return %arg0, %c0_i32, %c0_i32_0 : i32, i32, i32
  }
  func.func @transform_1(%arg0: i32) -> (i32, i32) {
    %c0_i32 = arith.constant 0 : i32
    %c0_i32_0 = arith.constant 0 : i32
    %c0_i32_1 = arith.constant 0 : i32
    return %c0_i32, %c0_i32_0 : i32, i32
  }
  func.func @transform_2(%arg0: i32) -> (i32, i32, i32) {
    %c0_i32 = arith.constant 0 : i32
    %c0_i32_0 = arith.constant 0 : i32
    %c0_i32_1 = arith.constant 0 : i32
    %c0_i32_2 = arith.constant 0 : i32
    return %c0_i32, %c0_i32_0, %c0_i32_1 : i32, i32, i32
  }
  func.func @transform_3(%arg0: i32) -> (i32, i32, i32) {
    %c0_i32 = arith.constant 0 : i32
    %c0_i32_0 = arith.constant 0 : i32
    %c0_i32_1 = arith.constant 0 : i32
    %c0_i32_2 = arith.constant 0 : i32
    return %c0_i32, %c0_i32_0, %c0_i32_1 : i32, i32, i32
  }
  func.func @transform_4(%arg0: i32) -> (i32, i32, i32) {
    %c0_i32 = arith.constant 0 : i32
    %c0_i32_0 = arith.constant 0 : i32
    %c0_i32_1 = arith.constant 0 : i32
    %c0_i32_2 = arith.constant 0 : i32
    return %c0_i32, %c0_i32_0, %c0_i32_1 : i32, i32, i32
  }
  func.func @transform_5(%arg0: i32) -> (i32, i32) {
    %c0_i32 = arith.constant 0 : i32
    %c0_i32_0 = arith.constant 0 : i32
    %c0_i32_1 = arith.constant 0 : i32
    return %c0_i32, %c0_i32_0 : i32, i32
  }
  func.func @transform_6(%arg0: i32) -> (i32, i32) {
    %c0_i32 = arith.constant 0 : i32
    %c0_i32_0 = arith.constant 0 : i32
    %c0_i32_1 = arith.constant 0 : i32
    return %c0_i32, %c0_i32_0 : i32, i32
  }
  func.func @transform_7(%arg0: i32) -> (i32, i32) {
    %c0_i32 = arith.constant 0 : i32
    %c0_i32_0 = arith.constant 0 : i32
    %c0_i32_1 = arith.constant 0 : i32
    return %c0_i32, %c0_i32_0 : i32, i32
  }
}

</mosaic_0001>

<bundles_post_ra>
// kernel: tpu_custom_call.1
= control target key start
LH: loop header
LB: loop body
LE: loop exit
PB: predicated region body
PF: predicated region fallthrough
CT: control target
= control target key end

     0   :  { %12 = vsyncpa [#allocation5], 0  ;;  %s2118_s0 = inlined_call_operand.vmem [shape: s32[8,8,1], index: 0, kind: input, shape index: {}]   ;;  %s2119_s1 = inlined_call_operand.hbm [shape: f32[128,128], index: 1, kind: input, shape index: {}]   ;;  %s2120_s2 = inlined_call_operand.hbm [shape: f32[3,128,512], index: 2, kind: input, shape index: {}]   ;;  %s2121_s3 = inlined_call_operand.hbm [shape: f32[3,128,512], index: 3, kind: input, shape index: {}]   ;;  %s2122_s4 = inlined_call_operand.vmem [shape: f32[3,1,512], index: 4, kind: input, shape index: {}]   ;;  %s2123_s5 = inlined_call_operand.hbm [shape: f32[128,128], index: 5, kind: input, shape index: {}]   ;;  %s2124_s6 = inlined_call_operand.vmem [shape: f32[1,128], index: 6, kind: input, shape index: {}]   ;;  %s2125_s7 = inlined_call_operand.hbm [shape: f32[8,128], index: 7, kind: output, shape index: {}]  }
   0x1   :  { %13 = vsyncpa [#allocation8], 0 }
   0x2   :  { %14 = vsyncpa [#allocation11], 0 }
   0x3   :  { %15 = vsyncpa [#allocation6], 0  ;;  %s1993_s24 = smov 0  }
   0x4 LB: > { %s224_s27 = sshll.u32 %s2120_s2, 4  ;;  %s2002_s28 = sadd.s32 4294967295, %s1939_s24   ;;  %s1939_s24 = sphi %s1993_s24, %s21_s24   ;;  %s225_s27 = int_to_ptr.hbm [resolvable:$true] %s224_s27 }
   0x5   : > { %p1635_p0 = scmp.ge.s32.totalorder %s1939_s24, 1  ;;  %p199_p1 = scmp.lt.s32.totalorder %s1939_s24, 9 }
   0x6   : > { %p1636_p2 = scmp.ne.s32.totalorder %s2002_s28, 0  ;;  %p1689_p3 = scmp.eq.s32.totalorder %s2002_s28, 0 }
   0x7   : > { %p2008_p4 = pnand %p1635_p0, %p199_p1  ;;  %s1941_s30 = smov [#allocation7]  }
   0x8   : > { %s226_s8 = sshll.u32 %s1941_s30, 4  ;;  %s210_s11 = sshll.u32 %s2119_s1, 4  ;;  %s227_s8 = int_to_ptr.vmem [resolvable:$true] %s226_s8  ;;  %s211_s11 = int_to_ptr.hbm [resolvable:$true] %s210_s11 }
   0x9   : > { %p1676_p5 = pneg %p2008_p4  ;;  %s1942_s13 = smov [#allocation4]  }
   0xa   : > { %s212_s14 = sshll.u32 %s1942_s13, 4  ;;  %s1943_s15 = smov 512   ;;  %s213_s14 = int_to_ptr.vmem [resolvable:$true] %s212_s14 }
   0xb   : > { %p2019_p6 = pnand %p1689_p3, %p1676_p5  ;;  %s1944_s16 = smov 32  }
   0xc   : > { %s238_s19 = sshll.u32 %s2121_s3, 4  ;;  %s1945_s20 = smov 128   ;;  %s239_s19 = int_to_ptr.hbm [resolvable:$true] %s238_s19 }
   0xd   : > { %1682 = dma.hbm_to_vmem [thread:$0]  (!%p2019_p6), %s225_s27, 24576, %s227_s8, [#allocation8], %s1943_s15, %s1943_s15, %s1944_s16  }
   0xe   : > { %s1946_s21 = smov 8   ;;  %s1947_s22 = smov [#allocation9]  }
   0xf   : > { %1679 = dma.hbm_to_vmem [thread:$0]  (!%p2019_p6), %s211_s11, 2048, %s213_s14, [#allocation5], %s1945_s20, %s1945_s20, %s1946_s21  }
  0x10   : > { %s240_s23 = sshll.u32 %s1947_s22, 4  ;;  %s255_s30 = sshll.u32 %s2123_s5, 4  ;;  %s241_s23 = int_to_ptr.vmem [resolvable:$true] %s240_s23  ;;  %s256_s30 = int_to_ptr.hbm [resolvable:$true] %s255_s30 }
  0x11   : > { %1685 = dma.hbm_to_vmem [thread:$0]  (!%p2019_p6), %s239_s19, 24576, %s241_s23, [#allocation8], %s1943_s15, %s1943_s15, %s1944_s16  }
  0x12   : > { %s1948_s27 = smov [#allocation10]   ;;  %283 = sbr.rel (%p2008_p4) target bundleno = 989 (0x3dd), region = 48 }
  0x13   : > { %s257_s8 = sshll.u32 %s1948_s27, 4  ;;  %s258_s8 = int_to_ptr.vmem [resolvable:$true] %s257_s8 }
  0x14   : > { %1688 = dma.hbm_to_vmem [thread:$0]  (!%p2019_p6), %s256_s30, 2048, %s258_s8, [#allocation11], %s1945_s20, %s1945_s20, %s1946_s21  }
  0x17   : > { %1922 = dma.done.wait (%p1689_p3), [#allocation5], 2048  }
  0x18   : > { %1924 = vsyncadd (%p1689_p3), [#allocation5], 4294965248 }
  0x19   : > { %1926 = dma.done.wait (%p1689_p3), [#allocation8], 49152  }
  0x1a   : > { %1928 = vsyncadd (%p1689_p3), [#allocation8], 4294918144 }
  0x1b   : > { %1930 = dma.done.wait (%p1689_p3), [#allocation11], 2048  }
  0x1c   : > { %1932 = vsyncadd (%p1689_p3), [#allocation11], 4294965248  ;;  %p325_p7 = scmp.lt.s32.totalorder %s2002_s28, 7 }
  0x1d   : > { %332 = sbr.rel (%p1636_p2) target bundleno = 41 (0x29), region = 68 }
  0x1e   : > { %s326_s29 = scalar_select %p325_p7, %s2002_s28, 7 }
  0x20   : > { %s1646_s9 = sshll.u32 %s326_s29, 3 }
  0x21   : > { %s328_s12 = scalar_lea.vmem %s2118_s0, %s1646_s9 }
  0x22   : > { %v1949_v0 = vmov 0.0  }
  0x23   : > { %333 = vst [vmem:[#allocation2 + $0x10] sm:$0xff] %v1949_v0 }
  0x24   : > { %334 = vst [vmem:[#allocation2] sm:$0xff] %v1949_v0 }
  0x25   : > { %335 = vst [vmem:[#allocation2 + $0x8] sm:$0xff] %v1949_v0 }
  0x26   : > { %336 = vst [vmem:[#allocation3 + $0x8] sm:$0xff] %v1949_v0 }
  0x27   : > { %337 = vst [vmem:[#allocation3] sm:$0xff] %v1949_v0 }
  0x28   : > { %338 = vst [vmem:[#allocation3 + $0x10] sm:$0xff] %v1949_v0 }
  0x29 PF: > { %v339_v1 = vld [vmem:[%s328_s12] sm:$0xff]  ;;  %v362_v2 = vld [vmem:[#allocation4 + $0x78] sm:$0xff]  ;;  %v1950_v4 = vmov 0   ;;  %v360_v5 = vld [vmem:[#allocation4 + $0x68] sm:$0xff]  ;;  %p1651_p8 = scmp.ne.s32.totalorder %s2002_s28, 7 }
  0x2a   : > { %v361_v3 = vld [vmem:[#allocation4 + $0x70] sm:$0xff]  ;;  %1719 = vset.pattern.permute.xlu0 %v1950_v4  ;;  %363 = vmatpush.msra.mxu0 %v362_v2  ;;  %v359_v6 = vld [vmem:[#allocation4 + $0x60] sm:$0xff]  ;;  %v358_v7 = vld [vmem:[#allocation4 + $0x58] sm:$0xff] }
  0x2b   : > { %343 = vperm.xlu0 %1719, %v339_v1   ;;  %v357_v8 = vld [vmem:[#allocation4 + $0x50] sm:$0xff]  ;;  %v356_v9 = vld [vmem:[#allocation4 + $0x48] sm:$0xff]  ;;  %v355_v10 = vld [vmem:[#allocation4 + $0x40] sm:$0xff] }
  0x2c   : > { %364 = vmatpush.msra.mxu0 %v361_v3  ;;  %v354_v11 = vld [vmem:[#allocation4 + $0x38] sm:$0xff]  ;;  %v353_v12 = vld [vmem:[#allocation4 + $0x30] sm:$0xff]  ;;  %v352_v13 = vld [vmem:[#allocation4 + $0x28] sm:$0xff] }
  0x2d   : > { %v351_v14 = vld [vmem:[#allocation4 + $0x20] sm:$0xff]  ;;  %v350_v15 = vld [vmem:[#allocation4 + $0x18] sm:$0xff]  ;;  %v349_v16 = vld [vmem:[#allocation4 + $0x10] sm:$0xff] }
  0x2e   : > { %365 = vmatpush.msra.mxu0 %v360_v5  ;;  %v348_v17 = vld [vmem:[#allocation4 + $0x8] sm:$0xff]  ;;  %v347_v18 = vld [vmem:[#allocation4] sm:$0xff]  ;;  %v511_v21 = vld [vmem:[#allocation9 + $0x1f0] sm:$0xff]  ;;  %v340_v5 = vlaneseq }
  0x2f   : > { %v509_v19 = vld [vmem:[#allocation9 + $0x1e0] sm:$0xff]  ;;  %v510_v20 = vld [vmem:[#allocation9 + $0x1e8] sm:$0xff]  ;;  %v512_v22 = vld [vmem:[#allocation9 + $0x1f8] sm:$0xff]  ;;  %553 = vmatpush.msra.mxu3 %v511_v21 }
  0x30   : > { %366 = vmatpush.msra.mxu0 %v359_v6  ;;  %513 = vmatpush.msra.mxu1 %v509_v19  ;;  %v505_v23 = vld [vmem:[#allocation9 + $0x1c0] sm:$0xff]  ;;  %v506_v24 = vld [vmem:[#allocation9 + $0x1c8] sm:$0xff]  ;;  %v507_v25 = vld [vmem:[#allocation9 + $0x1d0] sm:$0xff] }
  0x31   : > { %533 = vmatpush.msra.mxu2 %v510_v20  ;;  %v508_v26 = vld [vmem:[#allocation9 + $0x1d8] sm:$0xff]  ;;  %v501_v27 = vld [vmem:[#allocation9 + $0x1a0] sm:$0xff]  ;;  %v502_v28 = vld [vmem:[#allocation9 + $0x1a8] sm:$0xff]  ;;  %554 = vmatpush.msra.mxu3 %v507_v25  ;;  %v1951_v25 = vmov 1.0  }
  0x32   : > { %367 = vmatpush.msra.mxu0 %v358_v7  ;;  %514 = vmatpush.msra.mxu1 %v505_v23  ;;  %v503_v29 = vld [vmem:[#allocation9 + $0x1b0] sm:$0xff]  ;;  %v504_v30 = vld [vmem:[#allocation9 + $0x1b8] sm:$0xff]  ;;  %v497_v31 = vld [vmem:[#allocation9 + $0x180] sm:$0xff] }
  0x33   : > { %534 = vmatpush.msra.mxu2 %v506_v24  ;;  %v498_v32 = vld [vmem:[#allocation9 + $0x188] sm:$0xff]  ;;  %v499_v33 = vld [vmem:[#allocation9 + $0x190] sm:$0xff]  ;;  %v500_v34 = vld [vmem:[#allocation9 + $0x198] sm:$0xff]  ;;  %555 = vmatpush.msra.mxu3 %v503_v29 }
  0x34   : > { %368 = vmatpush.msra.mxu0 %v357_v8  ;;  %515 = vmatpush.msra.mxu1 %v501_v27  ;;  %v493_v35 = vld [vmem:[#allocation9 + $0x160] sm:$0xff]  ;;  %v494_v36 = vld [vmem:[#allocation9 + $0x168] sm:$0xff]  ;;  %v495_v37 = vld [vmem:[#allocation9 + $0x170] sm:$0xff] }
  0x35   : > { %535 = vmatpush.msra.mxu2 %v502_v28  ;;  %v496_v38 = vld [vmem:[#allocation9 + $0x178] sm:$0xff]  ;;  %556 = vmatpush.msra.mxu3 %v499_v33  ;;  %v489_v39 = vld [vmem:[#allocation9 + $0x140] sm:$0xff]  ;;  %v490_v40 = vld [vmem:[#allocation9 + $0x148] sm:$0xff] }
  0x36   : > { %369 = vmatpush.msra.mxu0 %v356_v9  ;;  %516 = vmatpush.msra.mxu1 %v497_v31  ;;  %v491_v41 = vld [vmem:[#allocation9 + $0x150] sm:$0xff]  ;;  %v492_v42 = vld [vmem:[#allocation9 + $0x158] sm:$0xff]  ;;  %v485_v43 = vld [vmem:[#allocation9 + $0x120] sm:$0xff] }
  0x37   : > { %536 = vmatpush.msra.mxu2 %v498_v32  ;;  %557 = vmatpush.msra.mxu3 %v495_v37  ;;  %v486_v44 = vld [vmem:[#allocation9 + $0x128] sm:$0xff]  ;;  %v487_v45 = vld [vmem:[#allocation9 + $0x130] sm:$0xff]  ;;  %v488_v46 = vld [vmem:[#allocation9 + $0x138] sm:$0xff] }
  0x38   : > { %370 = vmatpush.msra.mxu0 %v355_v10  ;;  %517 = vmatpush.msra.mxu1 %v493_v35  ;;  %v481_v47 = vld [vmem:[#allocation9 + $0x100] sm:$0xff]  ;;  %v482_v48 = vld [vmem:[#allocation9 + $0x108] sm:$0xff]  ;;  %v483_v49 = vld [vmem:[#allocation9 + $0x110] sm:$0xff] }
  0x39   : > { %537 = vmatpush.msra.mxu2 %v494_v36  ;;  %558 = vmatpush.msra.mxu3 %v491_v41  ;;  %v484_v50 = vld [vmem:[#allocation9 + $0x118] sm:$0xff]  ;;  %v477_v51 = vld [vmem:[#allocation9 + $0xe0] sm:$0xff]  ;;  %v478_v52 = vld [vmem:[#allocation9 + $0xe8] sm:$0xff] }
  0x3a   : > { %371 = vmatpush.msra.mxu0 %v354_v11  ;;  %518 = vmatpush.msra.mxu1 %v489_v39  ;;  %v479_v53 = vld [vmem:[#allocation9 + $0xf0] sm:$0xff]  ;;  %v480_v54 = vld [vmem:[#allocation9 + $0xf8] sm:$0xff]  ;;  %v473_v55 = vld [vmem:[#allocation9 + $0xc0] sm:$0xff] }
  0x3b   : > { %538 = vmatpush.msra.mxu2 %v490_v40  ;;  %559 = vmatpush.msra.mxu3 %v487_v45  ;;  %v474_v56 = vld [vmem:[#allocation9 + $0xc8] sm:$0xff]  ;;  %v475_v57 = vld [vmem:[#allocation9 + $0xd0] sm:$0xff]  ;;  %v476_v58 = vld [vmem:[#allocation9 + $0xd8] sm:$0xff] }
  0x3c   : > { %372 = vmatpush.msra.mxu0 %v353_v12  ;;  %519 = vmatpush.msra.mxu1 %v485_v43  ;;  %v469_v59 = vld [vmem:[#allocation9 + $0xa0] sm:$0xff]  ;;  %v470_v60 = vld [vmem:[#allocation9 + $0xa8] sm:$0xff]  ;;  %v471_v61 = vld [vmem:[#allocation9 + $0xb0] sm:$0xff] }
  0x3d   : > { %539 = vmatpush.msra.mxu2 %v486_v44  ;;  %560 = vmatpush.msra.mxu3 %v483_v49  ;;  %v472_v62 = vld [vmem:[#allocation9 + $0xb8] sm:$0xff]  ;;  %v465_v63 = vld [vmem:[#allocation9 + $0x80] sm:$0xff]  ;;  %v466_v0 = vld [vmem:[#allocation9 + $0x88] sm:$0xff] }
  0x3e   : > { %373 = vmatpush.msra.mxu0 %v352_v13  ;;  %520 = vmatpush.msra.mxu1 %v481_v47  ;;  %v467_v1 = vld [vmem:[#allocation9 + $0x90] sm:$0xff]  ;;  %v468_v2 = vld [vmem:[#allocation9 + $0x98] sm:$0xff]  ;;  %v461_v3 = vld [vmem:[#allocation9 + $0x60] sm:$0xff] }
  0x3f   : > { %540 = vmatpush.msra.mxu2 %v482_v48  ;;  %561 = vmatpush.msra.mxu3 %v479_v53  ;;  %v462_v4 = vld [vmem:[#allocation9 + $0x68] sm:$0xff]  ;;  %v463_v6 = vld [vmem:[#allocation9 + $0x70] sm:$0xff]  ;;  %v464_v7 = vld [vmem:[#allocation9 + $0x78] sm:$0xff] }
  0x40   : > { %374 = vmatpush.msra.mxu0 %v351_v14  ;;  %521 = vmatpush.msra.mxu1 %v477_v51  ;;  %v457_v8 = vld [vmem:[#allocation9 + $0x40] sm:$0xff]  ;;  %v458_v9 = vld [vmem:[#allocation9 + $0x48] sm:$0xff]  ;;  %v459_v10 = vld [vmem:[#allocation9 + $0x50] sm:$0xff]  ;;  %v341_v14 = vand.u32 127, %v340_v5 }
  0x41   : > { %541 = vmatpush.msra.mxu2 %v478_v52  ;;  %562 = vmatpush.msra.mxu3 %v475_v57  ;;  %v460_v11 = vld [vmem:[#allocation9 + $0x58] sm:$0xff]  ;;  %v453_v12 = vld [vmem:[#allocation9 + $0x20] sm:$0xff]  ;;  %v454_v13 = vld [vmem:[#allocation9 + $0x28] sm:$0xff] }
  0x42   : > { %375 = vmatpush.msra.mxu0 %v350_v15  ;;  %522 = vmatpush.msra.mxu1 %v473_v55  ;;  %v455_v15 = vld [vmem:[#allocation9 + $0x30] sm:$0xff]  ;;  %v452_v21 = vld [vmem:[#allocation9 + $0x18] sm:$0xff]  ;;  %v446_v23 = vld [vmem:[#allocation7 + $0x1e8] sm:$0xff] }
  0x43   : > { %542 = vmatpush.msra.mxu2 %v474_v56  ;;  %563 = vmatpush.msra.mxu3 %v471_v61  ;;  %v451_v19 = vld [vmem:[#allocation9 + $0x10] sm:$0xff]  ;;  %v441_v27 = vld [vmem:[#allocation7 + $0x1c0] sm:$0xff]  ;;  %v442_v28 = vld [vmem:[#allocation7 + $0x1c8] sm:$0xff] }
  0x44   : > { %376 = vmatpush.msra.mxu0 %v349_v16  ;;  %523 = vmatpush.msra.mxu1 %v469_v59  ;;  %v456_v16 = vld [vmem:[#allocation9 + $0x38] sm:$0xff]  ;;  %v447_v24 = vld [vmem:[#allocation7 + $0x1f0] sm:$0xff]  ;;  %v437_v31 = vld [vmem:[#allocation7 + $0x1a0] sm:$0xff] }
  0x45   : > { %543 = vmatpush.msra.mxu2 %v470_v60  ;;  %564 = vmatpush.msra.mxu3 %v467_v1  ;;  %v443_v29 = vld [vmem:[#allocation7 + $0x1d0] sm:$0xff]  ;;  %v438_v32 = vld [vmem:[#allocation7 + $0x1a8] sm:$0xff]  ;;  %v433_v35 = vld [vmem:[#allocation7 + $0x180] sm:$0xff] }
  0x46   : > { %377 = vmatpush.msra.mxu0 %v348_v17  ;;  %524 = vmatpush.msra.mxu1 %v465_v63  ;;  %v449_v17 = vld [vmem:[#allocation9] sm:$0xff]  ;;  %v439_v33 = vld [vmem:[#allocation7 + $0x1b0] sm:$0xff]  ;;  %v434_v36 = vld [vmem:[#allocation7 + $0x188] sm:$0xff] }
  0x47   : > { %544 = vmatpush.msra.mxu2 %v466_v0  ;;  %565 = vmatpush.msra.mxu3 %v463_v6  ;;  %v435_v37 = vld [vmem:[#allocation7 + $0x190] sm:$0xff]  ;;  %v429_v39 = vld [vmem:[#allocation7 + $0x160] sm:$0xff]  ;;  %v430_v40 = vld [vmem:[#allocation7 + $0x168] sm:$0xff] }
  0x48   : > { %378 = vmatpush.msra.mxu0 %v347_v18  ;;  %525 = vmatpush.msra.mxu1 %v461_v3  ;;  %v450_v18 = vld [vmem:[#allocation9 + $0x8] sm:$0xff]  ;;  %v431_v41 = vld [vmem:[#allocation7 + $0x170] sm:$0xff]  ;;  %v425_v43 = vld [vmem:[#allocation7 + $0x140] sm:$0xff] }
  0x49   : > { %545 = vmatpush.msra.mxu2 %v462_v4  ;;  %566 = vmatpush.msra.mxu3 %v459_v10  ;;  %v426_v44 = vld [vmem:[#allocation7 + $0x148] sm:$0xff]  ;;  %v427_v45 = vld [vmem:[#allocation7 + $0x150] sm:$0xff]  ;;  %v421_v47 = vld [vmem:[#allocation7 + $0x120] sm:$0xff] }
  0x4a   : > { %573 = vmatpush.msrb.mxu0 %v512_v22  ;;  %526 = vmatpush.msra.mxu1 %v457_v8  ;;  %v445_v22 = vld [vmem:[#allocation7 + $0x1e0] sm:$0xff]  ;;  %v422_v48 = vld [vmem:[#allocation7 + $0x128] sm:$0xff]  ;;  %v423_v49 = vld [vmem:[#allocation7 + $0x130] sm:$0xff] }
  0x4b   : > { %546 = vmatpush.msra.mxu2 %v458_v9  ;;  %567 = vmatpush.msra.mxu3 %v455_v15  ;;  %v417_v51 = vld [vmem:[#allocation7 + $0x100] sm:$0xff]  ;;  %v418_v52 = vld [vmem:[#allocation7 + $0x108] sm:$0xff]  ;;  %v419_v53 = vld [vmem:[#allocation7 + $0x110] sm:$0xff] }
  0x4c   : > { %574 = vmatpush.msrb.mxu0 %v508_v26  ;;  %527 = vmatpush.msra.mxu1 %v453_v12  ;;  %v448_v26 = vld [vmem:[#allocation7 + $0x1f8] sm:$0xff]  ;;  %v413_v55 = vld [vmem:[#allocation7 + $0xe0] sm:$0xff]  ;;  %v414_v56 = vld [vmem:[#allocation7 + $0xe8] sm:$0xff] }
  0x4d   : > { %547 = vmatpush.msra.mxu2 %v454_v13  ;;  %568 = vmatpush.msra.mxu3 %v451_v19  ;;  %v415_v57 = vld [vmem:[#allocation7 + $0xf0] sm:$0xff]  ;;  %v409_v59 = vld [vmem:[#allocation7 + $0xc0] sm:$0xff]  ;;  %v410_v60 = vld [vmem:[#allocation7 + $0xc8] sm:$0xff] }
  0x4e   : > { %575 = vmatpush.msrb.mxu0 %v504_v30  ;;  %528 = vmatpush.msra.mxu1 %v449_v17  ;;  %v444_v30 = vld [vmem:[#allocation7 + $0x1d8] sm:$0xff]  ;;  %v411_v61 = vld [vmem:[#allocation7 + $0xd0] sm:$0xff]  ;;  %v405_v63 = vld [vmem:[#allocation7 + $0xa0] sm:$0xff] }
  0x4f   : > { %548 = vmatpush.msra.mxu2 %v450_v18  ;;  %633 = vmatpush.msrb.mxu3 %v447_v24  ;;  %v406_v0 = vld [vmem:[#allocation7 + $0xa8] sm:$0xff]  ;;  %v407_v1 = vld [vmem:[#allocation7 + $0xb0] sm:$0xff]  ;;  %v401_v3 = vld [vmem:[#allocation7 + $0x80] sm:$0xff] }
  0x50   : > { %576 = vmatpush.msrb.mxu0 %v500_v34  ;;  %593 = vmatpush.msrb.mxu1 %v445_v22  ;;  %v440_v34 = vld [vmem:[#allocation7 + $0x1b8] sm:$0xff]  ;;  %v402_v4 = vld [vmem:[#allocation7 + $0x88] sm:$0xff]  ;;  %v403_v5 = vld [vmem:[#allocation7 + $0x90] sm:$0xff] }
  0x51   : > { %613 = vmatpush.msrb.mxu2 %v446_v23  ;;  %634 = vmatpush.msrb.mxu3 %v443_v29  ;;  %v404_v6 = vld [vmem:[#allocation7 + $0x98] sm:$0xff]  ;;  %v397_v8 = vld [vmem:[#allocation7 + $0x60] sm:$0xff]  ;;  %v398_v9 = vld [vmem:[#allocation7 + $0x68] sm:$0xff] }
  0x52   : > { %577 = vmatpush.msrb.mxu0 %v496_v38  ;;  %594 = vmatpush.msrb.mxu1 %v441_v27  ;;  %v436_v38 = vld [vmem:[#allocation7 + $0x198] sm:$0xff]  ;;  %v399_v10 = vld [vmem:[#allocation7 + $0x70] sm:$0xff]  ;;  %v393_v12 = vld [vmem:[#allocation7 + $0x40] sm:$0xff] }
  0x53   : > { %614 = vmatpush.msrb.mxu2 %v442_v28  ;;  %635 = vmatpush.msrb.mxu3 %v439_v33  ;;  %v394_v13 = vld [vmem:[#allocation7 + $0x48] sm:$0xff]  ;;  %v396_v15 = vld [vmem:[#allocation7 + $0x58] sm:$0xff]  ;;  %v391_v18 = vld [vmem:[#allocation7 + $0x30] sm:$0xff] }
  0x54   : > { %578 = vmatpush.msrb.mxu0 %v492_v42  ;;  %595 = vmatpush.msrb.mxu1 %v437_v31  ;;  %v432_v42 = vld [vmem:[#allocation7 + $0x178] sm:$0xff]  ;;  %v390_v17 = vld [vmem:[#allocation7 + $0x28] sm:$0xff]  ;;  %v387_v22 = vld [vmem:[#allocation7 + $0x10] sm:$0xff] }
  0x55   : > { %615 = vmatpush.msrb.mxu2 %v438_v32  ;;  %636 = vmatpush.msrb.mxu3 %v435_v37  ;;  %v392_v19 = vld [vmem:[#allocation7 + $0x38] sm:$0xff]  ;;  %v882_v24 = vld [vmem:[#allocation9 + $0x3e0] sm:$0xff]  ;;  %v879_v29 = vld [vmem:[#allocation9 + $0x3c8] sm:$0xff] }
  0x56   : > { %579 = vmatpush.msrb.mxu0 %v488_v46  ;;  %596 = vmatpush.msrb.mxu1 %v433_v35  ;;  %v428_v46 = vld [vmem:[#allocation7 + $0x158] sm:$0xff]  ;;  %v878_v28 = vld [vmem:[#allocation9 + $0x3c0] sm:$0xff]  ;;  %v875_v33 = vld [vmem:[#allocation9 + $0x3a8] sm:$0xff] }
  0x57   : > { %616 = vmatpush.msrb.mxu2 %v434_v36  ;;  %637 = vmatpush.msrb.mxu3 %v431_v41  ;;  %v388_v23 = vld [vmem:[#allocation7 + $0x18] sm:$0xff]  ;;  %v874_v32 = vld [vmem:[#allocation9 + $0x3a0] sm:$0xff]  ;;  %v876_v35 = vld [vmem:[#allocation9 + $0x3b0] sm:$0xff] }
  0x58   : > { %580 = vmatpush.msrb.mxu0 %v484_v50  ;;  %597 = vmatpush.msrb.mxu1 %v429_v39  ;;  %v424_v50 = vld [vmem:[#allocation7 + $0x138] sm:$0xff]  ;;  %v870_v37 = vld [vmem:[#allocation9 + $0x380] sm:$0xff]  ;;  %v872_v39 = vld [vmem:[#allocation9 + $0x390] sm:$0xff] }
  0x59   : > { %617 = vmatpush.msrb.mxu2 %v430_v40  ;;  %638 = vmatpush.msrb.mxu3 %v427_v45  ;;  %v885_v27 = vld [vmem:[#allocation9 + $0x3f8] sm:$0xff]  ;;  %v866_v41 = vld [vmem:[#allocation9 + $0x360] sm:$0xff] }
  0x5a   : > { %581 = vmatpush.msrb.mxu0 %v480_v54  ;;  %598 = vmatpush.msrb.mxu1 %v425_v43  ;;  %v420_v54 = vld [vmem:[#allocation7 + $0x118] sm:$0xff]  ;;  %v868_v43 = vld [vmem:[#allocation9 + $0x370] sm:$0xff]  ;;  %v862_v45 = vld [vmem:[#allocation9 + $0x340] sm:$0xff] }
  0x5b   : > { %618 = vmatpush.msrb.mxu2 %v426_v44  ;;  %639 = vmatpush.msrb.mxu3 %v423_v49  ;;  %v881_v31 = vld [vmem:[#allocation9 + $0x3d8] sm:$0xff]  ;;  %v858_v49 = vld [vmem:[#allocation9 + $0x320] sm:$0xff] }
  0x5c   : > { %582 = vmatpush.msrb.mxu0 %v476_v58  ;;  %599 = vmatpush.msrb.mxu1 %v421_v47  ;;  %v416_v58 = vld [vmem:[#allocation7 + $0xf8] sm:$0xff]  ;;  %v864_v47 = vld [vmem:[#allocation9 + $0x350] sm:$0xff] }
  0x5d   : > { %619 = vmatpush.msrb.mxu2 %v422_v48  ;;  %640 = vmatpush.msrb.mxu3 %v419_v53  ;;  %v877_v36 = vld [vmem:[#allocation9 + $0x3b8] sm:$0xff]  ;;  %v854_v53 = vld [vmem:[#allocation9 + $0x300] sm:$0xff] }
  0x5e   : > { %583 = vmatpush.msrb.mxu0 %v472_v62  ;;  %600 = vmatpush.msrb.mxu1 %v417_v51  ;;  %v412_v62 = vld [vmem:[#allocation7 + $0xd8] sm:$0xff]  ;;  %v860_v51 = vld [vmem:[#allocation9 + $0x330] sm:$0xff] }
  0x5f   : > { %620 = vmatpush.msrb.mxu2 %v418_v52  ;;  %641 = vmatpush.msrb.mxu3 %v415_v57  ;;  %v873_v40 = vld [vmem:[#allocation9 + $0x398] sm:$0xff]  ;;  %v850_v57 = vld [vmem:[#allocation9 + $0x2e0] sm:$0xff] }
  0x60   : > { %584 = vmatpush.msrb.mxu0 %v468_v2  ;;  %601 = vmatpush.msrb.mxu1 %v413_v55  ;;  %v408_v2 = vld [vmem:[#allocation7 + $0xb8] sm:$0xff]  ;;  %v856_v55 = vld [vmem:[#allocation9 + $0x310] sm:$0xff] }
  0x61   : > { %621 = vmatpush.msrb.mxu2 %v414_v56  ;;  %642 = vmatpush.msrb.mxu3 %v411_v61  ;;  %v869_v44 = vld [vmem:[#allocation9 + $0x378] sm:$0xff]  ;;  %v846_v61 = vld [vmem:[#allocation9 + $0x2c0] sm:$0xff] }
  0x62   : > { %585 = vmatpush.msrb.mxu0 %v464_v7  ;;  %602 = vmatpush.msrb.mxu1 %v409_v59  ;;  %v383_v7 = vld [vmem:[#allocation2 + $0x10] sm:$0xff]  ;;  %v865_v48 = vld [vmem:[#allocation9 + $0x358] sm:$0xff]  ;;  %v852_v59 = vld [vmem:[#allocation9 + $0x2f0] sm:$0xff] }
  0x63   : > { %622 = vmatpush.msrb.mxu2 %v410_v60  ;;  %643 = vmatpush.msrb.mxu3 %v407_v1  ;;  %v861_v52 = vld [vmem:[#allocation9 + $0x338] sm:$0xff]  ;;  %v842_v1 = vld [vmem:[#allocation9 + $0x2a0] sm:$0xff] }
  0x64   : > { %586 = vmatpush.msrb.mxu0 %v460_v11  ;;  %603 = vmatpush.msrb.mxu1 %v405_v63  ;;  %v400_v11 = vld [vmem:[#allocation7 + $0x78] sm:$0xff]  ;;  %v848_v63 = vld [vmem:[#allocation9 + $0x2d0] sm:$0xff] }
  0x65   : > { %623 = vmatpush.msrb.mxu2 %v406_v0  ;;  %644 = vmatpush.msrb.mxu3 %v403_v5  ;;  %v857_v56 = vld [vmem:[#allocation9 + $0x318] sm:$0xff]  ;;  %v838_v5 = vld [vmem:[#allocation9 + $0x280] sm:$0xff] }
  0x66   : > { %587 = vmatpush.msrb.mxu0 %v456_v16  ;;  %604 = vmatpush.msrb.mxu1 %v401_v3  ;;  %v389_v16 = vld [vmem:[#allocation7 + $0x20] sm:$0xff]  ;;  %v853_v60 = vld [vmem:[#allocation9 + $0x2f8] sm:$0xff]  ;;  %v844_v3 = vld [vmem:[#allocation9 + $0x2b0] sm:$0xff] }
  0x67   : > { %624 = vmatpush.msrb.mxu2 %v402_v4  ;;  %529 = vmatmul.f32.vlgmr.msra.gmra.mxu1 %v383_v7  ;;  %v849_v0 = vld [vmem:[#allocation9 + $0x2d8] sm:$0xff] }
  0x68   : > { %588 = vmatpush.msrb.mxu0 %v452_v21  ;;  %549 = vmatmul.f32.vlgmr.msra.gmra.mxu2 %v383_v7  ;;  %v386_v21 = vld [vmem:[#allocation7 + $0x8] sm:$0xff]  ;;  %v845_v4 = vld [vmem:[#allocation9 + $0x2b8] sm:$0xff] }
  0x69   : > { %569 = vmatmul.f32.vlgmr.msra.gmra.mxu3 %v383_v7  ;;  %605 = vmatpush.msrb.mxu1 %v397_v8  ;;  %v841_v8 = vld [vmem:[#allocation9 + $0x298] sm:$0xff] }
  0x6a   : > { %625 = vmatpush.msrb.mxu2 %v398_v9  ;;  %645 = vmatpush.msrb.mxu3 %v399_v10  ;;  %v834_v9 = vld [vmem:[#allocation9 + $0x260] sm:$0xff]  ;;  %v835_v10 = vld [vmem:[#allocation9 + $0x268] sm:$0xff] }
  0x6b   : > { %606 = vmatpush.msrb.mxu1 %v393_v12  ;;  %v837_v12 = vld [vmem:[#allocation9 + $0x278] sm:$0xff] }
  0x6c   : > { %626 = vmatpush.msrb.mxu2 %v394_v13  ;;  %v830_v13 = vld [vmem:[#allocation9 + $0x240] sm:$0xff] }
  0x6d   : > { %607 = vmatpush.msrb.mxu1 %v389_v16  ;;  %v833_v16 = vld [vmem:[#allocation9 + $0x258] sm:$0xff] }
  0x6e   : > { %627 = vmatpush.msrb.mxu2 %v390_v17  ;;  %v826_v17 = vld [vmem:[#allocation9 + $0x220] sm:$0xff] }
  0x70   : > { %628 = vmatpush.msrb.mxu2 %v386_v21 }
  0x9d   : > { %v344_v20 = vpop.permute.xlu0 %343 }
  0x9e   : > { %vm345_vm0 = vcmp.eq.s32.totalorder %v341_v14, %v344_v20  ;;  %v395_v14 = vld [vmem:[#allocation7 + $0x50] sm:$0xff]  ;;  %v385_v20 = vld [vmem:[#allocation7] sm:$0xff] }
  0x9f   : > { %1648 = vmatmul.msk.f32.vlgmr.msra.gmra.mxu0 %vm345_vm0, %v1951_v25  ;;  %646 = vmatpush.msrb.mxu3 %v395_v14  ;;  %v883_v25 = vld [vmem:[#allocation9 + $0x3e8] sm:$0xff] }
  0xa0   : > { %653 = vmatpush.msra.mxu0 %v448_v26  ;;  %608 = vmatpush.msrb.mxu1 %v385_v20  ;;  %v884_v26 = vld [vmem:[#allocation9 + $0x3f0] sm:$0xff]  ;;  %v831_v14 = vld [vmem:[#allocation9 + $0x248] sm:$0xff]  ;;  %v829_v20 = vld [vmem:[#allocation9 + $0x238] sm:$0xff] }
  0xa1   : > { %647 = vmatpush.msrb.mxu3 %v391_v18  ;;  %906 = vmatpush.msra.mxu2 %v883_v25  ;;  %v827_v18 = vld [vmem:[#allocation9 + $0x228] sm:$0xff] }
  0xa2   : > { %654 = vmatpush.msra.mxu0 %v444_v30  ;;  %886 = vmatpush.msra.mxu1 %v882_v24  ;;  %v880_v30 = vld [vmem:[#allocation9 + $0x3d0] sm:$0xff] }
  0xa3   : > { %648 = vmatpush.msrb.mxu3 %v387_v22  ;;  %907 = vmatpush.msra.mxu2 %v879_v29  ;;  %v822_v22 = vld [vmem:[#allocation9 + $0x200] sm:$0xff]  ;;  %v824_v24 = vld [vmem:[#allocation9 + $0x210] sm:$0xff] }
  0xa4   : > { %655 = vmatpush.msra.mxu0 %v440_v34  ;;  %887 = vmatpush.msra.mxu1 %v878_v28  ;;  %v818_v28 = vld [vmem:[#allocation7 + $0x3e8] sm:$0xff]  ;;  %v819_v29 = vld [vmem:[#allocation7 + $0x3f0] sm:$0xff] }
  0xa5   : > { %926 = vmatpush.msra.mxu3 %v884_v26  ;;  %908 = vmatpush.msra.mxu2 %v875_v33  ;;  %v825_v26 = vld [vmem:[#allocation9 + $0x218] sm:$0xff]  ;;  %v815_v33 = vld [vmem:[#allocation7 + $0x3d0] sm:$0xff] }
  0xa6   : > { %656 = vmatpush.msra.mxu0 %v436_v38  ;;  %888 = vmatpush.msra.mxu1 %v874_v32  ;;  %v871_v38 = vld [vmem:[#allocation9 + $0x388] sm:$0xff] }
  0xa7   : > { %589 = vmatmul.f32.vlgmr.msrb.gmra.mxu0 %v383_v7  ;;  %927 = vmatpush.msra.mxu3 %v880_v30  ;;  %v840_v7 = vld [vmem:[#allocation9 + $0x290] sm:$0xff]  ;;  %v820_v30 = vld [vmem:[#allocation7 + $0x3f8] sm:$0xff]  ;;  %v814_v32 = vld [vmem:[#allocation7 + $0x3c8] sm:$0xff] }
  0xa8   : > { %657 = vmatpush.msra.mxu0 %v432_v42  ;;  %889 = vmatpush.msra.mxu1 %v870_v37  ;;  %v867_v42 = vld [vmem:[#allocation9 + $0x368] sm:$0xff]  ;;  %v811_v37 = vld [vmem:[#allocation7 + $0x3b0] sm:$0xff] }
  0xa9   : > { %928 = vmatpush.msra.mxu3 %v876_v35  ;;  %909 = vmatpush.msra.mxu2 %v871_v38  ;;  %v809_v35 = vld [vmem:[#allocation7 + $0x3a0] sm:$0xff] }
  0xaa   : > { %658 = vmatpush.msra.mxu0 %v428_v46  ;;  %890 = vmatpush.msra.mxu1 %v866_v41  ;;  %v863_v46 = vld [vmem:[#allocation9 + $0x348] sm:$0xff]  ;;  %v805_v41 = vld [vmem:[#allocation7 + $0x380] sm:$0xff] }
  0xab   : > { %929 = vmatpush.msra.mxu3 %v872_v39  ;;  %910 = vmatpush.msra.mxu2 %v867_v42  ;;  %v2061_v39 = vld [vmem:[%s2122_s4] sm:$0xf]  ;;  %v806_v42 = vld [vmem:[#allocation7 + $0x388] sm:$0xff] }
  0xac   : > { %659 = vmatpush.msra.mxu0 %v424_v50  ;;  %891 = vmatpush.msra.mxu1 %v862_v45  ;;  %v859_v50 = vld [vmem:[#allocation9 + $0x328] sm:$0xff]  ;;  %v675_v45 = vperm.slane %v2061_v39, 0 }
  0xad   : > { %930 = vmatpush.msra.mxu3 %v868_v43  ;;  %911 = vmatpush.msra.mxu2 %v863_v46  ;;  %v807_v43 = vld [vmem:[#allocation7 + $0x390] sm:$0xff]  ;;  %v801_v46 = vld [vmem:[#allocation7 + $0x360] sm:$0xff] }
  0xae   : > { %660 = vmatpush.msra.mxu0 %v420_v54  ;;  %892 = vmatpush.msra.mxu1 %v858_v49  ;;  %v855_v54 = vld [vmem:[#allocation9 + $0x308] sm:$0xff] }
  0xaf   : > { %931 = vmatpush.msra.mxu3 %v864_v47  ;;  %912 = vmatpush.msra.mxu2 %v859_v50  ;;  %v802_v47 = vld [vmem:[#allocation7 + $0x368] sm:$0xff]  ;;  %v678_v50 = vperm.slane %v2061_v39, 3 }
  0xb0   : > { %661 = vmatpush.msra.mxu0 %v416_v58  ;;  %893 = vmatpush.msra.mxu1 %v854_v53  ;;  %v851_v58 = vld [vmem:[#allocation9 + $0x2e8] sm:$0xff] }
  0xb1   : > { %932 = vmatpush.msra.mxu3 %v860_v51  ;;  %913 = vmatpush.msra.mxu2 %v855_v54  ;;  %v804_v51 = vld [vmem:[#allocation7 + $0x378] sm:$0xff]  ;;  %v797_v54 = vld [vmem:[#allocation7 + $0x340] sm:$0xff] }
  0xb2   : > { %662 = vmatpush.msra.mxu0 %v412_v62  ;;  %894 = vmatpush.msra.mxu1 %v850_v57  ;;  %v847_v62 = vld [vmem:[#allocation9 + $0x2c8] sm:$0xff] }
  0xb3   : > { %933 = vmatpush.msra.mxu3 %v856_v55  ;;  %914 = vmatpush.msra.mxu2 %v851_v58  ;;  %v798_v55 = vld [vmem:[#allocation7 + $0x348] sm:$0xff]  ;;  %v800_v58 = vld [vmem:[#allocation7 + $0x358] sm:$0xff] }
  0xb4   : > { %663 = vmatpush.msra.mxu0 %v408_v2  ;;  %895 = vmatpush.msra.mxu1 %v846_v61  ;;  %v843_v2 = vld [vmem:[#allocation9 + $0x2a8] sm:$0xff] }
  0xb5   : > { %934 = vmatpush.msra.mxu3 %v852_v59  ;;  %915 = vmatpush.msra.mxu2 %v847_v62  ;;  %v794_v61 = vld [vmem:[#allocation7 + $0x328] sm:$0xff] }
  0xb6   : > { %664 = vmatpush.msra.mxu0 %v404_v6  ;;  %896 = vmatpush.msra.mxu1 %v842_v1  ;;  %v839_v6 = vld [vmem:[#allocation9 + $0x288] sm:$0xff] }
  0xb7   : > { %935 = vmatpush.msra.mxu3 %v848_v63  ;;  %916 = vmatpush.msra.mxu2 %v843_v2  ;;  %v795_v63 = vld [vmem:[#allocation7 + $0x330] sm:$0xff]  ;;  %v676_v2 = vperm.slane %v2061_v39, 1 }
  0xb8   : > { %665 = vmatpush.msra.mxu0 %v400_v11  ;;  %897 = vmatpush.msra.mxu1 %v838_v5  ;;  %v836_v11 = vld [vmem:[#allocation9 + $0x270] sm:$0xff] }
  0xb9   : > { %936 = vmatpush.msra.mxu3 %v844_v3  ;;  %917 = vmatpush.msra.mxu2 %v839_v6  ;;  %v789_v3 = vld [vmem:[#allocation7 + $0x300] sm:$0xff]  ;;  %v791_v5 = vld [vmem:[#allocation7 + $0x310] sm:$0xff] }
  0xba   : > { %666 = vmatpush.msra.mxu0 %v396_v15  ;;  %898 = vmatpush.msra.mxu1 %v834_v9  ;;  %v832_v15 = vld [vmem:[#allocation9 + $0x250] sm:$0xff] }
  0xbb   : > { %937 = vmatpush.msra.mxu3 %v840_v7  ;;  %918 = vmatpush.msra.mxu2 %v835_v10 }
  0xbc   : > { %667 = vmatpush.msra.mxu0 %v392_v19  ;;  %899 = vmatpush.msra.mxu1 %v830_v13  ;;  %v828_v19 = vld [vmem:[#allocation9 + $0x230] sm:$0xff] }
  0xbd   : > { %938 = vmatpush.msra.mxu3 %v836_v11  ;;  %919 = vmatpush.msra.mxu2 %v831_v14  ;;  %v785_v11 = vld [vmem:[#allocation7 + $0x2e0] sm:$0xff]  ;;  %v787_v13 = vld [vmem:[#allocation7 + $0x2f0] sm:$0xff] }
  0xbe   : > { %668 = vmatpush.msra.mxu0 %v388_v23  ;;  %900 = vmatpush.msra.mxu1 %v826_v17  ;;  %v823_v23 = vld [vmem:[#allocation9 + $0x208] sm:$0xff]  ;;  %v781_v17 = vld [vmem:[#allocation7 + $0x2c0] sm:$0xff] }
  0xbf   : > { %939 = vmatpush.msra.mxu3 %v832_v15  ;;  %920 = vmatpush.msra.mxu2 %v827_v18  ;;  %v788_v15 = vld [vmem:[#allocation7 + $0x2f8] sm:$0xff]  ;;  %v782_v18 = vld [vmem:[#allocation7 + $0x2c8] sm:$0xff] }
  0xc0   : > { %946 = vmatpush.msrb.mxu0 %v885_v27  ;;  %901 = vmatpush.msra.mxu1 %v822_v22  ;;  %v817_v27 = vld [vmem:[#allocation7 + $0x3e0] sm:$0xff] }
  0xc1   : > { %940 = vmatpush.msra.mxu3 %v828_v19  ;;  %921 = vmatpush.msra.mxu2 %v823_v23  ;;  %v783_v19 = vld [vmem:[#allocation7 + $0x2d0] sm:$0xff]  ;;  %v777_v22 = vld [vmem:[#allocation7 + $0x2a0] sm:$0xff]  ;;  %v778_v23 = vld [vmem:[#allocation7 + $0x2a8] sm:$0xff] }
  0xc2   : > { %947 = vmatpush.msrb.mxu0 %v881_v31  ;;  %v813_v31 = vld [vmem:[#allocation7 + $0x3c0] sm:$0xff] }
  0xc3   : > { %941 = vmatpush.msra.mxu3 %v824_v24  ;;  %v779_v24 = vld [vmem:[#allocation7 + $0x2b0] sm:$0xff] }
  0xc4   : > { %948 = vmatpush.msrb.mxu0 %v877_v36  ;;  %v810_v36 = vld [vmem:[#allocation7 + $0x3a8] sm:$0xff] }
  0xc6   : > { %949 = vmatpush.msrb.mxu0 %v873_v40  ;;  %v812_v40 = vld [vmem:[#allocation7 + $0x3b8] sm:$0xff] }
  0xc8   : > { %950 = vmatpush.msrb.mxu0 %v869_v44  ;;  %v808_v44 = vld [vmem:[#allocation7 + $0x398] sm:$0xff] }
  0xca   : > { %951 = vmatpush.msrb.mxu0 %v865_v48  ;;  %v803_v48 = vld [vmem:[#allocation7 + $0x370] sm:$0xff] }
  0xcc   : > { %952 = vmatpush.msrb.mxu0 %v861_v52 }
  0xce   : > { %953 = vmatpush.msrb.mxu0 %v857_v56  ;;  %v799_v56 = vld [vmem:[#allocation7 + $0x350] sm:$0xff] }
  0xd0   : > { %954 = vmatpush.msrb.mxu0 %v853_v60  ;;  %v793_v60 = vld [vmem:[#allocation7 + $0x320] sm:$0xff] }
  0xd2   : > { %955 = vmatpush.msrb.mxu0 %v849_v0  ;;  %v796_v0 = vld [vmem:[#allocation7 + $0x338] sm:$0xff] }
  0xd4   : > { %956 = vmatpush.msrb.mxu0 %v845_v4  ;;  %v790_v4 = vld [vmem:[#allocation7 + $0x308] sm:$0xff] }
  0xd6   : > { %957 = vmatpush.msrb.mxu0 %v841_v8  ;;  %v792_v8 = vld [vmem:[#allocation7 + $0x318] sm:$0xff] }
  0xd8   : > { %958 = vmatpush.msrb.mxu0 %v837_v12  ;;  %v786_v12 = vld [vmem:[#allocation7 + $0x2e8] sm:$0xff] }
  0xda   : > { %959 = vmatpush.msrb.mxu0 %v833_v16 }
  0xdc   : > { %960 = vmatpush.msrb.mxu0 %v829_v20  ;;  %v784_v20 = vld [vmem:[#allocation7 + $0x2d8] sm:$0xff] }
  0xde   : > { %961 = vmatpush.msrb.mxu0 %v825_v26 }
  0xe4   : > { %v530_v21 = vpop.f32.mrf.mxu1 }
  0xeb   : > { %v550_v38 = vpop.f32.mrf.mxu2 }
  0xec   : > { %v570_v26 = vpop.f32.mrf.mxu3 }
 0x11c   : > { %v380_v34 = vpop.f32.mrf.mxu0 }
 0x11d   : > { %609 = vmatmul.f32.vlgmr.msrb.gmra.mxu1 %v380_v34  ;;  %629 = vmatmul.f32.vlgmr.msrb.gmra.mxu2 %v380_v34 }
 0x11e   : > { %649 = vmatmul.f32.vlgmr.msrb.gmra.mxu3 %v380_v34  ;;  %669 = vmatmul.f32.vlgmr.msra.gmra.mxu0 %v380_v34  ;;  %v816_v34 = vld [vmem:[#allocation7 + $0x3d8] sm:$0xff] }
 0x11f   : > { %966 = vmatpush.msrb.mxu1 %v817_v27  ;;  %986 = vmatpush.msrb.mxu2 %v818_v28  ;;  %v773_v28 = vld [vmem:[#allocation7 + $0x280] sm:$0xff] }
 0x120   : > { %1006 = vmatpush.msrb.mxu3 %v819_v29  ;;  %1026 = vmatpush.msra.mxu0 %v820_v30  ;;  %v774_v29 = vld [vmem:[#allocation7 + $0x288] sm:$0xff]  ;;  %v775_v30 = vld [vmem:[#allocation7 + $0x290] sm:$0xff] }
 0x121   : > { %967 = vmatpush.msrb.mxu1 %v813_v31  ;;  %987 = vmatpush.msrb.mxu2 %v814_v32  ;;  %v776_v31 = vld [vmem:[#allocation7 + $0x298] sm:$0xff]  ;;  %v753_v32 = vld [vmem:[#allocation2] sm:$0xff] }
 0x122   : > { %1007 = vmatpush.msrb.mxu3 %v815_v33  ;;  %1027 = vmatpush.msra.mxu0 %v816_v34 }
 0x123   : > { %968 = vmatpush.msrb.mxu1 %v809_v35  ;;  %988 = vmatpush.msrb.mxu2 %v810_v36  ;;  %v769_v36 = vld [vmem:[#allocation7 + $0x260] sm:$0xff] }
 0x124   : > { %v590_v25 = vpop.f32.mrf.mxu0  ;;  %1008 = vmatpush.msrb.mxu3 %v811_v37  ;;  %1028 = vmatpush.msra.mxu0 %v812_v40  ;;  %v770_v37 = vld [vmem:[#allocation7 + $0x268] sm:$0xff]  ;;  %v772_v40 = vld [vmem:[#allocation7 + $0x278] sm:$0xff] }
 0x125   : > { %969 = vmatpush.msrb.mxu1 %v805_v41  ;;  %989 = vmatpush.msrb.mxu2 %v806_v42  ;;  %v765_v41 = vld [vmem:[#allocation7 + $0x240] sm:$0xff]  ;;  %v766_v42 = vld [vmem:[#allocation7 + $0x248] sm:$0xff] }
 0x126   : > { %1009 = vmatpush.msrb.mxu3 %v807_v43  ;;  %1029 = vmatpush.msra.mxu0 %v808_v44  ;;  %v767_v44 = vld [vmem:[#allocation7 + $0x250] sm:$0xff] }
 0x127   : > { %970 = vmatpush.msrb.mxu1 %v801_v46  ;;  %990 = vmatpush.msrb.mxu2 %v802_v47  ;;  %v761_v46 = vld [vmem:[#allocation7 + $0x220] sm:$0xff]  ;;  %v762_v47 = vld [vmem:[#allocation7 + $0x228] sm:$0xff] }
 0x128   : > { %1010 = vmatpush.msrb.mxu3 %v803_v48  ;;  %1030 = vmatpush.msra.mxu0 %v804_v51 }
 0x129   : > { %971 = vmatpush.msrb.mxu1 %v797_v54  ;;  %991 = vmatpush.msrb.mxu2 %v798_v55  ;;  %v759_v55 = vld [vmem:[#allocation7 + $0x210] sm:$0xff] }
 0x12a   : > { %1011 = vmatpush.msrb.mxu3 %v799_v56  ;;  %1031 = vmatpush.msra.mxu0 %v800_v58  ;;  %v760_v56 = vld [vmem:[#allocation7 + $0x218] sm:$0xff] }
 0x12b   : > { %972 = vmatpush.msrb.mxu1 %v793_v60  ;;  %992 = vmatpush.msrb.mxu2 %v794_v61  ;;  %v677_v60 = vperm.slane %v2061_v39, 2 }
 0x12c   : > { %1012 = vmatpush.msrb.mxu3 %v795_v63  ;;  %1032 = vmatpush.msra.mxu0 %v796_v0 }
 0x12d   : > { %973 = vmatpush.msrb.mxu1 %v789_v3  ;;  %993 = vmatpush.msrb.mxu2 %v790_v4 }
 0x12e   : > { %1013 = vmatpush.msrb.mxu3 %v791_v5  ;;  %1033 = vmatpush.msra.mxu0 %v792_v8 }
 0x12f   : > { %974 = vmatpush.msrb.mxu1 %v785_v11  ;;  %994 = vmatpush.msrb.mxu2 %v786_v12 }
 0x130   : > { %1014 = vmatpush.msrb.mxu3 %v787_v13  ;;  %1034 = vmatpush.msra.mxu0 %v788_v15  ;;  %v384_v15 = vld [vmem:[#allocation3 + $0x8] sm:$0xff] }
 0x131   : > { %975 = vmatpush.msrb.mxu1 %v781_v17  ;;  %995 = vmatpush.msrb.mxu2 %v782_v18 }
 0x132   : > { %1015 = vmatpush.msrb.mxu3 %v783_v19  ;;  %1035 = vmatpush.msra.mxu0 %v784_v20 }
 0x133   : > { %976 = vmatpush.msrb.mxu1 %v777_v22  ;;  %996 = vmatpush.msrb.mxu2 %v778_v23 }
 0x134   : > { %1016 = vmatpush.msrb.mxu3 %v779_v24  ;;  %902 = vmatmul.f32.vlgmr.msra.gmra.mxu1 %v753_v32 }
 0x135   : > { %977 = vmatpush.msrb.mxu1 %v773_v28  ;;  %997 = vmatpush.msrb.mxu2 %v774_v29 }
 0x136   : > { %1017 = vmatpush.msrb.mxu3 %v775_v30  ;;  %922 = vmatmul.f32.vlgmr.msra.gmra.mxu2 %v753_v32 }
 0x137   : > { %942 = vmatmul.f32.vlgmr.msra.gmra.mxu3 %v753_v32  ;;  %962 = vmatmul.f32.vlgmr.msrb.gmra.mxu0 %v753_v32  ;;  %v1256_v32 = vld [vmem:[#allocation9 + $0x5e0] sm:$0xff] }
 0x138   : > { %978 = vmatpush.msrb.mxu1 %v769_v36  ;;  %998 = vmatpush.msrb.mxu2 %v770_v37  ;;  %v1252_v36 = vld [vmem:[#allocation9 + $0x5c0] sm:$0xff]  ;;  %v1253_v37 = vld [vmem:[#allocation9 + $0x5c8] sm:$0xff] }
 0x13a   : > { %979 = vmatpush.msrb.mxu1 %v765_v41  ;;  %999 = vmatpush.msrb.mxu2 %v766_v42  ;;  %v1248_v41 = vld [vmem:[#allocation9 + $0x5a0] sm:$0xff]  ;;  %v1249_v42 = vld [vmem:[#allocation9 + $0x5a8] sm:$0xff] }
 0x13c   : > { %980 = vmatpush.msrb.mxu1 %v761_v46  ;;  %1000 = vmatpush.msrb.mxu2 %v762_v47  ;;  %v1245_v46 = vld [vmem:[#allocation9 + $0x588] sm:$0xff]  ;;  %v1246_v47 = vld [vmem:[#allocation9 + $0x590] sm:$0xff] }
 0x19a   : > { %v610_v49 = vpop.f32.mrf.mxu1 }
 0x19b   : > { %v611_v52 = vadd.f32 %v610_v49, %v530_v21  ;;  %v670_v53 = vpop.f32.mrf.mxu0  ;;  %v763_v49 = vld [vmem:[#allocation7 + $0x230] sm:$0xff] }
 0x19c   : > { %v671_v57 = vadd.f32 %v670_v53, %v590_v25  ;;  %v780_v25 = vld [vmem:[#allocation7 + $0x2b8] sm:$0xff]  ;;  %v758_v53 = vld [vmem:[#allocation7 + $0x208] sm:$0xff] }
 0x19d   : > { %v683_v59 = vadd.f32 %v675_v45, %v611_v52  ;;  %1036 = vmatpush.msra.mxu0 %v780_v25  ;;  %v768_v45 = vld [vmem:[#allocation7 + $0x258] sm:$0xff]  ;;  %v757_v52 = vld [vmem:[#allocation7 + $0x200] sm:$0xff]  ;;  %1001 = vmatpush.msrb.mxu2 %v758_v53 }
 0x19e   : > { %v686_v62 = vadd.f32 %v678_v50, %v671_v57  ;;  %v764_v50 = vld [vmem:[#allocation7 + $0x238] sm:$0xff]  ;;  %981 = vmatpush.msrb.mxu1 %v757_v52  ;;  %v1236_v53 = vld [vmem:[#allocation9 + $0x540] sm:$0xff] }
 0x19f   : > { %v687_v1 = vsub.f32 0.0, %v683_v59  ;;  %1037 = vmatpush.msra.mxu0 %v776_v31  ;;  %v1243_v52 = vld [vmem:[#allocation9 + $0x578] sm:$0xff] }
 0x1a0   : > { %v726_v6 = vsub.f32 0.0, %v686_v62  ;;  %v630_v7 = vpop.f32.mrf.mxu2  ;;  %1260 = vmatpush.msra.mxu1 %v1256_v32 }
 0x1a1   : > { %v688_v9 = vmul.f32 1.442695, %v687_v1  ;;  %v631_v10 = vadd.f32 %v630_v7, %v550_v38  ;;  %v771_v38 = vld [vmem:[#allocation7 + $0x270] sm:$0xff]  ;;  %1038 = vmatpush.msra.mxu0 %v772_v40  ;;  %v650_v54 = vpop.f32.mrf.mxu3  ;;  %v1255_v40 = vld [vmem:[#allocation9 + $0x5d8] sm:$0xff] }
 0x1a2   : > { %v727_v14 = vmul.f32 1.442695, %v726_v6  ;;  %1018 = vmatpush.msrb.mxu3 %v771_v38  ;;  %v651_v59 = vadd.f32 %v650_v54, %v570_v26  ;;  %v1254_v38 = vld [vmem:[#allocation9 + $0x5d0] sm:$0xff]  ;;  %1261 = vmatpush.msra.mxu1 %v1252_v36  ;;  %v1237_v54 = vld [vmem:[#allocation9 + $0x548] sm:$0xff] }
 0x1a3   : > { %1720 = vpow2.f32 %v688_v9  ;;  %v684_v16 = vadd.f32 %v676_v2, %v631_v10  ;;  %1039 = vmatpush.msra.mxu0 %v768_v45  ;;  %v1244_v45 = vld [vmem:[#allocation9 + $0x580] sm:$0xff]  ;;  %v1193_v36 = vld [vmem:[#allocation7 + $0x5f0] sm:$0xff] }
 0x1a4   : > { %1722 = vpow2.f32 %v727_v14  ;;  %1019 = vmatpush.msrb.mxu3 %v767_v44  ;;  %v685_v1 = vadd.f32 %v677_v60, %v651_v59  ;;  %v1251_v44 = vld [vmem:[#allocation9 + $0x5b8] sm:$0xff]  ;;  %1262 = vmatpush.msra.mxu1 %v1248_v41  ;;  %v1234_v59 = vld [vmem:[#allocation9 + $0x530] sm:$0xff] }
 0x1a5   : > { %v706_v21 = vsub.f32 0.0, %v684_v16  ;;  %1040 = vmatpush.msra.mxu0 %v764_v50  ;;  %v1241_v50 = vld [vmem:[#allocation9 + $0x568] sm:$0xff]  ;;  %v1235_v60 = vld [vmem:[#allocation9 + $0x538] sm:$0xff]  ;;  %v1189_v41 = vld [vmem:[#allocation7 + $0x5d0] sm:$0xff] }
 0x1a6   : > { %1020 = vmatpush.msrb.mxu3 %v763_v49  ;;  %1263 = vmatpush.msra.mxu1 %v1244_v45  ;;  %v1240_v49 = vld [vmem:[#allocation9 + $0x560] sm:$0xff]  ;;  %v1185_v45 = vld [vmem:[#allocation7 + $0x5b0] sm:$0xff] }
 0x1a7   : > { %v707_v27 = vmul.f32 1.442695, %v706_v21  ;;  %1041 = vmatpush.msra.mxu0 %v760_v56  ;;  %v1239_v56 = vld [vmem:[#allocation9 + $0x558] sm:$0xff] }
 0x1a8   : > { %1021 = vmatpush.msrb.mxu3 %v759_v55  ;;  %1264 = vmatpush.msra.mxu1 %v1240_v49  ;;  %v1238_v55 = vld [vmem:[#allocation9 + $0x550] sm:$0xff]  ;;  %v1179_v49 = vld [vmem:[#allocation7 + $0x580] sm:$0xff] }
 0x1a9   : > { %v1721_v33 = vpop.eup %1720  ;;  %1724 = vpow2.f32 %v707_v27 }
 0x1aa   : > { %v1723_v34 = vpop.eup %1722  ;;  %v2066_v35 = vadd.f32 1.0, %v1721_v33  ;;  %v1257_v33 = vld [vmem:[#allocation9 + $0x5e8] sm:$0xff]  ;;  %1265 = vmatpush.msra.mxu1 %v1236_v53 }
 0x1ab   : > { %v2069_v43 = vadd.f32 1.0, %v1723_v34  ;;  %v1258_v34 = vld [vmem:[#allocation9 + $0x5f0] sm:$0xff]  ;;  %1280 = vmatpush.msra.mxu2 %v1257_v33  ;;  %v1199_v33 = vld [vmem:[#allocation9 + $0x418] sm:$0xff] }
 0x1ac   : > { %1726 = vrcp.f32 %v2066_v35  ;;  %v702_v5 = vand.u32 2147483648, %v2066_v35  ;;  %vm696_vm2 = vweird.f32 %v2066_v35  ;;  %v700_v7 = vand.u32 2147483647, %v2066_v35  ;;  %1300 = vmatpush.msra.mxu3 %v1258_v34  ;;  %v1191_v34 = vld [vmem:[#allocation7 + $0x5e0] sm:$0xff] }
 0x1ad   : > { %1728 = vrcp.f32 %v2069_v43  ;;  %v741_v25 = vand.u32 2147483648, %v2069_v43  ;;  %vm735_vm10 = vweird.f32 %v2069_v43  ;;  %v739_v26 = vand.u32 2147483647, %v2069_v43  ;;  %1281 = vmatpush.msra.mxu2 %v1253_v37  ;;  %v1194_v37 = vld [vmem:[#allocation7 + $0x5f8] sm:$0xff] }
 0x1ae   : > { %v703_v12 = vor.u32 1.1754944e-38, %v702_v5  ;;  %vm701_vm6 = vcmp.eq.f32.partialorder %v700_v7, 8.507059e+37  ;;  %1301 = vmatpush.msra.mxu3 %v1254_v38  ;;  %v1220_v5 = vld [vmem:[#allocation9 + $0x4c0] sm:$0xff]  ;;  %v1222_v7 = vld [vmem:[#allocation9 + $0x4d0] sm:$0xff] }
 0x1af   : > { %v1725_v48 = vpop.eup %1724  ;;  %v742_v28 = vor.u32 1.1754944e-38, %v741_v25  ;;  %vm740_vm12 = vcmp.eq.f32.partialorder %v739_v26, 8.507059e+37  ;;  %1282 = vmatpush.msra.mxu2 %v1249_v42  ;;  %v1201_v25 = vld [vmem:[#allocation9 + $0x428] sm:$0xff]  ;;  %v1202_v26 = vld [vmem:[#allocation9 + $0x430] sm:$0xff]  ;;  %v1187_v38 = vld [vmem:[#allocation7 + $0x5c0] sm:$0xff] }
 0x1b0   : > { %v709_v51 = vadd.f32 1.0, %v1725_v48  ;;  %v1247_v48 = vld [vmem:[#allocation9 + $0x598] sm:$0xff] }
 0x1b1   : > { %1283 = vmatpush.msra.mxu2 %v1245_v46  ;;  %v1190_v42 = vld [vmem:[#allocation7 + $0x5d8] sm:$0xff] }
 0x1b2   : > { %v1727_v57 = vpop.eup %1726  ;;  %1730 = vrcp.f32 %v709_v51  ;;  %v721_v39 = vand.u32 2147483648, %v709_v51  ;;  %v719_v10 = vand.u32 2147483647, %v709_v51  ;;  %vm715_vm5 = vweird.f32 %v709_v51 }
 0x1b3   : > { %v692_v58 = vmul.f32 %v1727_v57, %v2066_v35  ;;  %v1729_v62 = vpop.eup %1728  ;;  %vm697_vm1 = vweird.f32 %v1727_v57  ;;  %1732 = vtanh.f32 %v685_v1  ;;  %v1259_v35 = vld [vmem:[#allocation9 + $0x5f8] sm:$0xff]  ;;  %1284 = vmatpush.msra.mxu2 %v1241_v50  ;;  %v1224_v1 = vld [vmem:[#allocation9 + $0x4e0] sm:$0xff]  ;;  %v1180_v50 = vld [vmem:[#allocation7 + $0x588] sm:$0xff] }
 0x1b4   : > { %v731_v4 = vmul.f32 %v1729_v62, %v2069_v43  ;;  %vm698_vm3 = vmor %vm696_vm2, %vm697_vm1  ;;  %v722_v14 = vor.u32 1.1754944e-38, %v721_v39  ;;  %vm720_vm8 = vcmp.eq.f32.partialorder %v719_v10, 8.507059e+37  ;;  %vm736_vm9 = vweird.f32 %v1729_v62  ;;  %1320 = vmatpush.msrb.mxu0 %v1259_v35  ;;  %v1250_v43 = vld [vmem:[#allocation9 + $0x5b0] sm:$0xff]  ;;  %v1223_v39 = vld [vmem:[#allocation9 + $0x4d8] sm:$0xff]  ;;  %v963_v32 = vpop.f32.mrf.mxu0 }
 0x1b5   : > { %v693_v61 = vsub.f32 1.0, %v692_v58  ;;  %vm737_vm11 = vmor %vm735_vm10, %vm736_vm9  ;;  %1302 = vmatpush.msra.mxu3 %v1250_v43  ;;  %1285 = vmatpush.msra.mxu2 %v1237_v54  ;;  %v1233_v58 = vld [vmem:[#allocation9 + $0x528] sm:$0xff]  ;;  %v1218_v10 = vld [vmem:[#allocation9 + $0x4b0] sm:$0xff] }
 0x1b6   : > { %v732_v11 = vsub.f32 1.0, %v731_v4  ;;  %1321 = vmatpush.msrb.mxu0 %v1255_v40  ;;  %v1227_v4 = vld [vmem:[#allocation9 + $0x4f8] sm:$0xff]  ;;  %v1192_v35 = vld [vmem:[#allocation7 + $0x5e8] sm:$0xff]  ;;  %v1183_v43 = vld [vmem:[#allocation7 + $0x5a0] sm:$0xff] }
 0x1b7   : > { %v694_v63 = vmul.f32 %v1727_v57, %v693_v61  ;;  %1303 = vmatpush.msra.mxu3 %v1246_v47  ;;  %1286 = vmatpush.msra.mxu2 %v1233_v58  ;;  %v1228_v61 = vld [vmem:[#allocation9 + $0x500] sm:$0xff]  ;;  %v1188_v40 = vld [vmem:[#allocation7 + $0x5c8] sm:$0xff]  ;;  %v2084_v47 = vld [vmem:[%s2122_s4 + $0x4] sm:$0xf] }
 0x1b8   : > { %v1731_v0 = vpop.eup %1730  ;;  %v733_v19 = vmul.f32 %v1729_v62, %v732_v11  ;;  %1322 = vmatpush.msrb.mxu0 %v1251_v44  ;;  %v1219_v11 = vld [vmem:[#allocation9 + $0x4b8] sm:$0xff]  ;;  %v1184_v44 = vld [vmem:[#allocation7 + $0x5a8] sm:$0xff]  ;;  %v1049_v53 = vperm.slane %v2084_v47, 0  ;;  %v1175_v54 = vld [vmem:[#allocation7 + $0x560] sm:$0xff]  ;;  %v1052_v58 = vperm.slane %v2084_v47, 3 }
 0x1b9   : > { %v711_v2 = vmul.f32 %v1731_v0, %v709_v51  ;;  %v695_v3 = vadd.f32 %v1727_v57, %v694_v63  ;;  %vm716_vm4 = vweird.f32 %v1731_v0  ;;  %v1733_v18 = vpop.eup %1732  ;;  %v1242_v51 = vld [vmem:[#allocation9 + $0x570] sm:$0xff]  ;;  %v923_v46 = vpop.f32.mrf.mxu2 }
 0x1ba   : > { %vm717_vm7 = vmor %vm715_vm5, %vm716_vm4  ;;  %v734_v24 = vadd.f32 %v1729_v62, %v733_v19  ;;  %1323 = vmatpush.msrb.mxu0 %v1247_v48  ;;  %1304 = vmatpush.msra.mxu3 %v1242_v51  ;;  %v1230_v63 = vld [vmem:[#allocation9 + $0x510] sm:$0xff]  ;;  %v1211_v19 = vld [vmem:[#allocation9 + $0x478] sm:$0xff] }
 0x1bb   : > { %v712_v6 = vsub.f32 1.0, %v711_v2  ;;  %v699_v9 = vsel %vm698_vm3, %v1727_v57, %v695_v3  ;;  %v1232_v57 = vld [vmem:[#allocation9 + $0x520] sm:$0xff]  ;;  %v1225_v2 = vld [vmem:[#allocation9 + $0x4e8] sm:$0xff]  ;;  %v1226_v3 = vld [vmem:[#allocation9 + $0x4f0] sm:$0xff] }
 0x1bc   : > { %v704_v16 = vsel %vm701_vm6, %v703_v12, %v699_v9  ;;  %v738_v27 = vsel %vm737_vm11, %v1729_v62, %v734_v24  ;;  %1324 = vmatpush.msrb.mxu0 %v1243_v52  ;;  %1305 = vmatpush.msra.mxu3 %v1238_v55  ;;  %v1229_v62 = vld [vmem:[#allocation9 + $0x508] sm:$0xff]  ;;  %v1212_v12 = vld [vmem:[#allocation9 + $0x480] sm:$0xff]  ;;  %v1186_v48 = vld [vmem:[#allocation7 + $0x5b8] sm:$0xff] }
 0x1bd   : > { %v713_v8 = vmul.f32 %v1731_v0, %v712_v6  ;;  %v746_v22 = vmul.f32 %v1733_v18, %v704_v16  ;;  %v743_v30 = vsel %vm740_vm12, %v742_v28, %v738_v27  ;;  %1266 = vmatpush.msra.mxu1 %v1232_v57  ;;  %1287 = vmatpush.msra.mxu2 %v1229_v62  ;;  %v1221_v6 = vld [vmem:[#allocation9 + $0x4c8] sm:$0xff]  ;;  %v1208_v16 = vld [vmem:[#allocation9 + $0x460] sm:$0xff]  ;;  %v1210_v18 = vld [vmem:[#allocation9 + $0x470] sm:$0xff]  ;;  %v903_v28 = vpop.f32.mrf.mxu1 }
 0x1be   : > { %1325 = vmatpush.msrb.mxu0 %v1239_v56  ;;  %1306 = vmatpush.msra.mxu3 %v1234_v59  ;;  %v1217_v9 = vld [vmem:[#allocation9 + $0x4a8] sm:$0xff]  ;;  %v1200_v24 = vld [vmem:[#allocation9 + $0x420] sm:$0xff]  ;;  %v1203_v27 = vld [vmem:[#allocation9 + $0x438] sm:$0xff] }
 0x1bf   : > { %v714_v13 = vadd.f32 %v1731_v0, %v713_v8  ;;  %1267 = vmatpush.msra.mxu1 %v1228_v61  ;;  %1288 = vmatpush.msra.mxu2 %v1225_v2  ;;  %v1216_v8 = vld [vmem:[#allocation9 + $0x4a0] sm:$0xff]  ;;  %v1181_v51 = vld [vmem:[#allocation7 + $0x590] sm:$0xff]  ;;  %v1182_v52 = vld [vmem:[#allocation7 + $0x598] sm:$0xff] }
 0x1c0   : > { %1326 = vmatpush.msrb.mxu0 %v1235_v60  ;;  %1307 = vmatpush.msra.mxu3 %v1230_v63  ;;  %v1176_v55 = vld [vmem:[#allocation7 + $0x568] sm:$0xff]  ;;  %v1177_v56 = vld [vmem:[#allocation7 + $0x570] sm:$0xff]  ;;  %v1178_v59 = vld [vmem:[#allocation7 + $0x578] sm:$0xff] }
 0x1c1   : > { %v718_v17 = vsel %vm717_vm7, %v1731_v0, %v714_v13  ;;  %v1231_v0 = vld [vmem:[#allocation9 + $0x518] sm:$0xff]  ;;  %1268 = vmatpush.msra.mxu1 %v1224_v1  ;;  %1289 = vmatpush.msra.mxu2 %v1221_v6  ;;  %v1213_v13 = vld [vmem:[#allocation9 + $0x488] sm:$0xff]  ;;  %v1171_v62 = vld [vmem:[#allocation7 + $0x540] sm:$0xff] }
 0x1c2   : > { %v723_v20 = vsel %vm720_vm8, %v722_v14, %v718_v17  ;;  %1327 = vmatpush.msrb.mxu0 %v1231_v0  ;;  %1308 = vmatpush.msra.mxu3 %v1226_v3  ;;  %v1214_v14 = vld [vmem:[#allocation9 + $0x490] sm:$0xff]  ;;  %v1209_v17 = vld [vmem:[#allocation9 + $0x468] sm:$0xff]  ;;  %v1174_v2 = vld [vmem:[#allocation7 + $0x558] sm:$0xff] }
 0x1c3   : > { %v745_v21 = vmul.f32 %v723_v20, %v384_v15  ;;  %1269 = vmatpush.msra.mxu1 %v1220_v5  ;;  %1290 = vmatpush.msra.mxu2 %v1217_v9  ;;  %v1215_v15 = vld [vmem:[#allocation9 + $0x498] sm:$0xff]  ;;  %v1204_v20 = vld [vmem:[#allocation9 + $0x440] sm:$0xff]  ;;  %v1172_v63 = vld [vmem:[#allocation7 + $0x548] sm:$0xff]  ;;  %v1050_v9 = vperm.slane %v2084_v47, 1 }
 0x1c4   : > { %1328 = vmatpush.msrb.mxu0 %v1227_v4  ;;  %1309 = vmatpush.msra.mxu3 %v1222_v7  ;;  %v1173_v0 = vld [vmem:[#allocation7 + $0x550] sm:$0xff]  ;;  %v1167_v4 = vld [vmem:[#allocation7 + $0x520] sm:$0xff]  ;;  %v1168_v5 = vld [vmem:[#allocation7 + $0x528] sm:$0xff] }
 0x1c5   : > { %v747_v23 = vadd.f32 %v746_v22, %v745_v21  ;;  %1270 = vmatpush.msra.mxu1 %v1216_v8  ;;  %1291 = vmatpush.msra.mxu2 %v1213_v13  ;;  %v1205_v21 = vld [vmem:[#allocation9 + $0x448] sm:$0xff]  ;;  %v1206_v22 = vld [vmem:[#allocation9 + $0x450] sm:$0xff] }
 0x1c6   : > { %1329 = vmatpush.msrb.mxu0 %v1223_v39  ;;  %1310 = vmatpush.msra.mxu3 %v1218_v10  ;;  %v1169_v7 = vld [vmem:[#allocation7 + $0x530] sm:$0xff]  ;;  %v1170_v39 = vld [vmem:[#allocation7 + $0x538] sm:$0xff]  ;;  %v1163_v10 = vld [vmem:[#allocation7 + $0x500] sm:$0xff] }
 0x1c7   : > { %1734 = vtanh.f32 %v747_v23  ;;  %751 = vst [vmem:[#allocation3 + $0x8] sm:$0xff] %v747_v23  ;;  %1271 = vmatpush.msra.mxu1 %v1212_v12  ;;  %1292 = vmatpush.msra.mxu2 %v1209_v17  ;;  %v1207_v23 = vld [vmem:[#allocation9 + $0x458] sm:$0xff]  ;;  %v1165_v12 = vld [vmem:[#allocation7 + $0x510] sm:$0xff] }
 0x1c8   : > { %1330 = vmatpush.msrb.mxu0 %v1219_v11  ;;  %1311 = vmatpush.msra.mxu3 %v1214_v14  ;;  %v1164_v11 = vld [vmem:[#allocation7 + $0x508] sm:$0xff] }
 0x1c9   : > { %1272 = vmatpush.msra.mxu1 %v1208_v16  ;;  %1293 = vmatpush.msra.mxu2 %v1205_v21 }
 0x1ca   : > { %1331 = vmatpush.msrb.mxu0 %v1215_v15  ;;  %1312 = vmatpush.msra.mxu3 %v1210_v18  ;;  %v1166_v15 = vld [vmem:[#allocation7 + $0x518] sm:$0xff]  ;;  %v1159_v18 = vld [vmem:[#allocation7 + $0x4e0] sm:$0xff] }
 0x1cb   : > { %1273 = vmatpush.msra.mxu1 %v1204_v20  ;;  %1294 = vmatpush.msra.mxu2 %v1201_v25  ;;  %v1161_v20 = vld [vmem:[#allocation7 + $0x4f0] sm:$0xff]  ;;  %v1156_v25 = vld [vmem:[#allocation7 + $0x4c8] sm:$0xff] }
 0x1cc   : > { %1332 = vmatpush.msrb.mxu0 %v1211_v19  ;;  %1313 = vmatpush.msra.mxu3 %v1206_v22  ;;  %v1160_v19 = vld [vmem:[#allocation7 + $0x4e8] sm:$0xff]  ;;  %v1162_v22 = vld [vmem:[#allocation7 + $0x4f8] sm:$0xff] }
 0x1cd   : > { %v1735_v29 = vpop.eup %1734  ;;  %1274 = vmatpush.msra.mxu1 %v1200_v24  ;;  %v1155_v24 = vld [vmem:[#allocation7 + $0x4c0] sm:$0xff] }
 0x1ce   : > { %v749_v31 = vmul.f32 %v1735_v29, %v743_v30  ;;  %1333 = vmatpush.msrb.mxu0 %v1207_v23  ;;  %1314 = vmatpush.msra.mxu3 %v1202_v26  ;;  %v1196_v29 = vld [vmem:[#allocation9 + $0x400] sm:$0xff]  ;;  %v1197_v30 = vld [vmem:[#allocation9 + $0x408] sm:$0xff]  ;;  %v1157_v26 = vld [vmem:[#allocation7 + $0x4d0] sm:$0xff] }
 0x1cf   : > { %1275 = vmatpush.msra.mxu1 %v1196_v29  ;;  %1295 = vmatpush.msra.mxu2 %v1197_v30  ;;  %v1151_v29 = vld [vmem:[#allocation7 + $0x4a0] sm:$0xff]  ;;  %v1152_v30 = vld [vmem:[#allocation7 + $0x4a8] sm:$0xff] }
 0x1d0   : > { %750 = vst [vmem:[#allocation2 + $0x10] sm:$0xff] %v749_v31  ;;  %982 = vmatmul.f32.vlgmr.msrb.gmra.mxu1 %v749_v31  ;;  %1002 = vmatmul.f32.vlgmr.msrb.gmra.mxu2 %v749_v31 }
 0x1d1   : > { %1022 = vmatmul.f32.vlgmr.msrb.gmra.mxu3 %v749_v31  ;;  %1042 = vmatmul.f32.vlgmr.msra.gmra.mxu0 %v749_v31  ;;  %v1198_v31 = vld [vmem:[#allocation9 + $0x410] sm:$0xff] }
 0x1d2   : > { %1334 = vmatpush.msrb.mxu0 %v1203_v27  ;;  %1315 = vmatpush.msra.mxu3 %v1198_v31  ;;  %v1158_v27 = vld [vmem:[#allocation7 + $0x4d8] sm:$0xff]  ;;  %v1153_v31 = vld [vmem:[#allocation7 + $0x4b0] sm:$0xff] }
 0x1d3   : > { %1340 = vmatpush.msrb.mxu1 %v1191_v34  ;;  %1360 = vmatpush.msrb.mxu2 %v1192_v35  ;;  %v1147_v35 = vld [vmem:[#allocation7 + $0x480] sm:$0xff] }
 0x1d4   : > { %1335 = vmatpush.msrb.mxu0 %v1199_v33  ;;  %1380 = vmatpush.msrb.mxu3 %v1193_v36  ;;  %v943_v33 = vpop.f32.mrf.mxu3  ;;  %v1148_v36 = vld [vmem:[#allocation7 + $0x488] sm:$0xff] }
 0x1d5   : > { %1341 = vmatpush.msrb.mxu1 %v1187_v38  ;;  %1361 = vmatpush.msrb.mxu2 %v1188_v40  ;;  %v1150_v38 = vld [vmem:[#allocation7 + $0x498] sm:$0xff] }
 0x1d6   : > { %1400 = vmatpush.msra.mxu0 %v1194_v37  ;;  %1381 = vmatpush.msrb.mxu3 %v1189_v41  ;;  %v1149_v37 = vld [vmem:[#allocation7 + $0x490] sm:$0xff]  ;;  %v1127_v40 = vld [vmem:[#allocation2 + $0x8] sm:$0xff] }
 0x1d7   : > { %1342 = vmatpush.msrb.mxu1 %v1183_v43  ;;  %1362 = vmatpush.msrb.mxu2 %v1184_v44  ;;  %v1143_v44 = vld [vmem:[#allocation7 + $0x460] sm:$0xff] }
 0x1d8   : > { %1401 = vmatpush.msra.mxu0 %v1190_v42  ;;  %1382 = vmatpush.msrb.mxu3 %v1185_v45  ;;  %v1144_v45 = vld [vmem:[#allocation7 + $0x468] sm:$0xff] }
 0x1d9   : > { %1343 = vmatpush.msrb.mxu1 %v1179_v49  ;;  %1363 = vmatpush.msrb.mxu2 %v1180_v50  ;;  %v1139_v49 = vld [vmem:[#allocation7 + $0x440] sm:$0xff]  ;;  %v1140_v50 = vld [vmem:[#allocation7 + $0x448] sm:$0xff] }
 0x1da   : > { %1402 = vmatpush.msra.mxu0 %v1186_v48  ;;  %1383 = vmatpush.msrb.mxu3 %v1181_v51  ;;  %v1146_v48 = vld [vmem:[#allocation7 + $0x478] sm:$0xff] }
 0x1db   : > { %1344 = vmatpush.msrb.mxu1 %v1175_v54  ;;  %1364 = vmatpush.msrb.mxu2 %v1176_v55  ;;  %v1135_v54 = vld [vmem:[#allocation7 + $0x420] sm:$0xff]  ;;  %v1136_v55 = vld [vmem:[#allocation7 + $0x428] sm:$0xff] }
 0x1dc   : > { %1403 = vmatpush.msra.mxu0 %v1182_v52  ;;  %1384 = vmatpush.msrb.mxu3 %v1177_v56  ;;  %v1141_v52 = vld [vmem:[#allocation7 + $0x450] sm:$0xff] }
 0x1dd   : > { %1345 = vmatpush.msrb.mxu1 %v1171_v62  ;;  %1365 = vmatpush.msrb.mxu2 %v1172_v63  ;;  %v1133_v63 = vld [vmem:[#allocation7 + $0x410] sm:$0xff] }
 0x1de   : > { %1404 = vmatpush.msra.mxu0 %v1178_v59  ;;  %1385 = vmatpush.msrb.mxu3 %v1173_v0  ;;  %v1134_v0 = vld [vmem:[#allocation7 + $0x418] sm:$0xff] }
 0x1df   : > { %1346 = vmatpush.msrb.mxu1 %v1167_v4  ;;  %1366 = vmatpush.msrb.mxu2 %v1168_v5  ;;  %v1051_v4 = vperm.slane %v2084_v47, 2 }
 0x1e0   : > { %1405 = vmatpush.msra.mxu0 %v1174_v2  ;;  %1386 = vmatpush.msrb.mxu3 %v1169_v7 }
 0x1e1   : > { %1347 = vmatpush.msrb.mxu1 %v1163_v10  ;;  %1367 = vmatpush.msrb.mxu2 %v1164_v11 }
 0x1e2   : > { %1406 = vmatpush.msra.mxu0 %v1170_v39  ;;  %1387 = vmatpush.msrb.mxu3 %v1165_v12 }
 0x1e3   : > { %1348 = vmatpush.msrb.mxu1 %v1159_v18  ;;  %1368 = vmatpush.msrb.mxu2 %v1160_v19 }
 0x1e4   : > { %1407 = vmatpush.msra.mxu0 %v1166_v15  ;;  %1388 = vmatpush.msrb.mxu3 %v1161_v20 }
 0x1e5   : > { %1349 = vmatpush.msrb.mxu1 %v1155_v24  ;;  %1369 = vmatpush.msrb.mxu2 %v1156_v25 }
 0x1e6   : > { %1408 = vmatpush.msra.mxu0 %v1162_v22  ;;  %1389 = vmatpush.msrb.mxu3 %v1157_v26  ;;  %v755_v22 = vld [vmem:[#allocation3] sm:$0xff] }
 0x1e7   : > { %1350 = vmatpush.msrb.mxu1 %v1151_v29  ;;  %1370 = vmatpush.msrb.mxu2 %v1152_v30 }
 0x1e8   : > { %1409 = vmatpush.msra.mxu0 %v1158_v27  ;;  %1390 = vmatpush.msrb.mxu3 %v1153_v31 }
 0x1e9   : > { %1351 = vmatpush.msrb.mxu1 %v1147_v35  ;;  %1371 = vmatpush.msrb.mxu2 %v1148_v36 }
 0x1ea   : > { %1391 = vmatpush.msrb.mxu3 %v1149_v37  ;;  %1276 = vmatmul.f32.vlgmr.msra.gmra.mxu1 %v1127_v40 }
 0x1eb   : > { %1296 = vmatmul.f32.vlgmr.msra.gmra.mxu2 %v1127_v40  ;;  %1316 = vmatmul.f32.vlgmr.msra.gmra.mxu3 %v1127_v40 }
 0x1ec   : > { %1336 = vmatmul.f32.vlgmr.msrb.gmra.mxu0 %v1127_v40  ;;  %1352 = vmatpush.msrb.mxu1 %v1143_v44 }
 0x1ed   : > { %1372 = vmatpush.msrb.mxu2 %v1144_v45 }
 0x1ee   : > { %1353 = vmatpush.msrb.mxu1 %v1139_v49 }
 0x1ef   : > { %1373 = vmatpush.msrb.mxu2 %v1140_v50 }
 0x1f0   : > { %1354 = vmatpush.msrb.mxu1 %v1135_v54 }
 0x1f1   : > { %1374 = vmatpush.msrb.mxu2 %v1136_v55 }
 0x24d   : > { %v983_v57 = vpop.f32.mrf.mxu1 }
 0x24e   : > { %v984_v60 = vadd.f32 %v983_v57, %v903_v28  ;;  %v1043_v61 = vpop.f32.mrf.mxu0  ;;  %v1137_v57 = vld [vmem:[#allocation7 + $0x430] sm:$0xff] }
 0x24f   : > { %v1044_v1 = vadd.f32 %v1043_v61, %v963_v32  ;;  %v1154_v32 = vld [vmem:[#allocation7 + $0x4b8] sm:$0xff]  ;;  %v1132_v61 = vld [vmem:[#allocation7 + $0x408] sm:$0xff] }
 0x250   : > { %v1057_v3 = vadd.f32 %v1049_v53, %v984_v60  ;;  %1410 = vmatpush.msra.mxu0 %v1154_v32  ;;  %v1142_v53 = vld [vmem:[#allocation7 + $0x458] sm:$0xff]  ;;  %v1131_v60 = vld [vmem:[#allocation7 + $0x400] sm:$0xff]  ;;  %1375 = vmatpush.msrb.mxu2 %v1132_v61 }
 0x251   : > { %v1060_v6 = vadd.f32 %v1052_v58, %v1044_v1  ;;  %v1138_v58 = vld [vmem:[#allocation7 + $0x438] sm:$0xff]  ;;  %1355 = vmatpush.msrb.mxu1 %v1131_v60 }
 0x252   : > { %v1061_v8 = vsub.f32 0.0, %v1057_v3  ;;  %1411 = vmatpush.msra.mxu0 %v1150_v38 }
 0x253   : > { %v1100_v13 = vsub.f32 0.0, %v1060_v6  ;;  %v1003_v14 = vpop.f32.mrf.mxu2 }
 0x254   : > { %v1062_v16 = vmul.f32 1.442695, %v1061_v8  ;;  %v1004_v17 = vadd.f32 %v1003_v14, %v923_v46  ;;  %v1145_v46 = vld [vmem:[#allocation7 + $0x470] sm:$0xff]  ;;  %1412 = vmatpush.msra.mxu0 %v1146_v48  ;;  %v1023_v62 = vpop.f32.mrf.mxu3 }
 0x255   : > { %v1101_v21 = vmul.f32 1.442695, %v1100_v13  ;;  %1392 = vmatpush.msrb.mxu3 %v1145_v46  ;;  %v1024_v3 = vadd.f32 %v1023_v62, %v943_v33 }
 0x256   : > { %1736 = vpow2.f32 %v1062_v16  ;;  %v1058_v23 = vadd.f32 %v1050_v9, %v1004_v17  ;;  %1413 = vmatpush.msra.mxu0 %v1142_v53 }
 0x257   : > { %1738 = vpow2.f32 %v1101_v21  ;;  %1393 = vmatpush.msrb.mxu3 %v1141_v52  ;;  %v1059_v8 = vadd.f32 %v1051_v4, %v1024_v3 }
 0x258   : > { %v1080_v28 = vsub.f32 0.0, %v1058_v23  ;;  %1414 = vmatpush.msra.mxu0 %v1138_v58 }
 0x259   : > { %1394 = vmatpush.msrb.mxu3 %v1137_v57 }
 0x25a   : > { %v1081_v34 = vmul.f32 1.442695, %v1080_v28  ;;  %1415 = vmatpush.msra.mxu0 %v1134_v0 }
 0x25b   : > { %1395 = vmatpush.msrb.mxu3 %v1133_v63 }
 0x25c   : > { %v1737_v41 = vpop.eup %1736  ;;  %1740 = vpow2.f32 %v1081_v34 }
 0x25d   : > { %v1739_v42 = vpop.eup %1738  ;;  %v2089_v43 = vadd.f32 1.0, %v1737_v41 }
 0x25e   : > { %v2092_v51 = vadd.f32 1.0, %v1739_v42 }
 0x25f   : > { %1742 = vrcp.f32 %v2089_v43  ;;  %v1076_v12 = vand.u32 2147483648, %v2089_v43  ;;  %vm1070_vm14 = vweird.f32 %v2089_v43  ;;  %v1074_v14 = vand.u32 2147483647, %v2089_v43 }
 0x260   : > { %1744 = vrcp.f32 %v2092_v51  ;;  %v1115_v32 = vand.u32 2147483648, %v2092_v51  ;;  %vm1109_vm6 = vweird.f32 %v2092_v51  ;;  %v1113_v33 = vand.u32 2147483647, %v2092_v51 }
 0x261   : > { %v1077_v19 = vor.u32 1.1754944e-38, %v1076_v12  ;;  %vm1075_vm2 = vcmp.eq.f32.partialorder %v1074_v14, 8.507059e+37 }
 0x262   : > { %v1741_v56 = vpop.eup %1740  ;;  %v1116_v35 = vor.u32 1.1754944e-38, %v1115_v32  ;;  %vm1114_vm8 = vcmp.eq.f32.partialorder %v1113_v33, 8.507059e+37 }
 0x263   : > { %v1083_v59 = vadd.f32 1.0, %v1741_v56 }
 0x265   : > { %v1743_v1 = vpop.eup %1742  ;;  %1746 = vrcp.f32 %v1083_v59  ;;  %v1095_v47 = vand.u32 2147483648, %v1083_v59  ;;  %v1093_v17 = vand.u32 2147483647, %v1083_v59  ;;  %vm1089_vm1 = vweird.f32 %v1083_v59 }
 0x266   : > { %v1066_v2 = vmul.f32 %v1743_v1, %v2089_v43  ;;  %v1745_v6 = vpop.eup %1744  ;;  %vm1071_vm13 = vweird.f32 %v1743_v1  ;;  %1748 = vtanh.f32 %v1059_v8  ;;  %v1650_v43 = vld [vmem:[%s2122_s4 + $0x8] sm:$0xf] }
 0x267   : > { %v1105_v11 = vmul.f32 %v1745_v6, %v2092_v51  ;;  %vm1072_vm15 = vmor %vm1070_vm14, %vm1071_vm13  ;;  %v1096_v21 = vor.u32 1.1754944e-38, %v1095_v47  ;;  %vm1094_vm4 = vcmp.eq.f32.partialorder %v1093_v17, 8.507059e+37  ;;  %vm1110_vm5 = vweird.f32 %v1745_v6  ;;  %v1277_v40 = vpop.f32.mrf.mxu1 }
 0x268   : > { %v1067_v5 = vsub.f32 1.0, %v1066_v2  ;;  %vm1111_vm7 = vmor %vm1109_vm6, %vm1110_vm5  ;;  %v1423_v44 = vperm.slane %v1650_v43, 0  ;;  %v1426_v46 = vperm.slane %v1650_v43, 3  ;;  %v1424_v54 = vperm.slane %v1650_v43, 1 }
 0x269   : > { %v1106_v18 = vsub.f32 1.0, %v1105_v11  ;;  %v1337_v41 = vpop.f32.mrf.mxu0 }
 0x26a   : > { %v1068_v7 = vmul.f32 %v1743_v1, %v1067_v5 }
 0x26b   : > { %v1747_v39 = vpop.eup %1746  ;;  %v1107_v26 = vmul.f32 %v1745_v6, %v1106_v18 }
 0x26c   : > { %v1085_v9 = vmul.f32 %v1747_v39, %v1083_v59  ;;  %v1069_v10 = vadd.f32 %v1743_v1, %v1068_v7  ;;  %vm1090_vm0 = vweird.f32 %v1747_v39  ;;  %v1749_v25 = vpop.eup %1748 }
 0x26d   : > { %vm1091_vm3 = vmor %vm1089_vm1, %vm1090_vm0  ;;  %v1108_v31 = vadd.f32 %v1745_v6, %v1107_v26 }
 0x26e   : > { %v1086_v13 = vsub.f32 1.0, %v1085_v9  ;;  %v1073_v16 = vsel %vm1072_vm15, %v1743_v1, %v1069_v10  ;;  %v1297_v42 = vpop.f32.mrf.mxu2  ;;  %v1317_v62 = vpop.f32.mrf.mxu3  ;;  %v1425_v9 = vperm.slane %v1650_v43, 2 }
 0x26f   : > { %v1078_v23 = vsel %vm1075_vm2, %v1077_v19, %v1073_v16  ;;  %v1112_v34 = vsel %vm1111_vm7, %v1745_v6, %v1108_v31 }
 0x270   : > { %v1087_v15 = vmul.f32 %v1747_v39, %v1086_v13  ;;  %v1120_v29 = vmul.f32 %v1749_v25, %v1078_v23  ;;  %v1117_v37 = vsel %vm1114_vm8, %v1116_v35, %v1112_v34 }
 0x272   : > { %v1088_v20 = vadd.f32 %v1747_v39, %v1087_v15 }
 0x274   : > { %v1092_v24 = vsel %vm1091_vm3, %v1747_v39, %v1088_v20 }
 0x275   : > { %v1097_v27 = vsel %vm1094_vm4, %v1096_v21, %v1092_v24 }
 0x276   : > { %v1119_v28 = vmul.f32 %v1097_v27, %v755_v22 }
 0x278   : > { %v1121_v30 = vadd.f32 %v1120_v29, %v1119_v28  ;;  %v1129_v28 = vld [vmem:[#allocation3 + $0x10] sm:$0xff] }
 0x27a   : > { %1750 = vtanh.f32 %v1121_v30  ;;  %1125 = vst [vmem:[#allocation3] sm:$0xff] %v1121_v30 }
 0x280   : > { %v1751_v36 = vpop.eup %1750 }
 0x281   : > { %v1123_v38 = vmul.f32 %v1751_v36, %v1117_v37 }
 0x283   : > { %1124 = vst [vmem:[#allocation2] sm:$0xff] %v1123_v38  ;;  %1356 = vmatmul.f32.vlgmr.msrb.gmra.mxu1 %v1123_v38  ;;  %1376 = vmatmul.f32.vlgmr.msrb.gmra.mxu2 %v1123_v38 }
 0x284   : > { %1396 = vmatmul.f32.vlgmr.msrb.gmra.mxu3 %v1123_v38  ;;  %1416 = vmatmul.f32.vlgmr.msra.gmra.mxu0 %v1123_v38 }
 0x300   : > { %v1357_v45 = vpop.f32.mrf.mxu1 }
 0x301   : > { %v1358_v48 = vadd.f32 %v1357_v45, %v1277_v40  ;;  %v1417_v49 = vpop.f32.mrf.mxu0 }
 0x302   : > { %v1418_v50 = vadd.f32 %v1417_v49, %v1337_v41 }
 0x303   : > { %v1431_v51 = vadd.f32 %v1423_v44, %v1358_v48 }
 0x304   : > { %v1434_v52 = vadd.f32 %v1426_v46, %v1418_v50 }
 0x305   : > { %v1435_v53 = vsub.f32 0.0, %v1431_v51 }
 0x306   : > { %v1474_v55 = vsub.f32 0.0, %v1434_v52  ;;  %v1377_v56 = vpop.f32.mrf.mxu2 }
 0x307   : > { %v1436_v57 = vmul.f32 1.442695, %v1435_v53  ;;  %v1378_v58 = vadd.f32 %v1377_v56, %v1297_v42  ;;  %v1397_v6 = vpop.f32.mrf.mxu3 }
 0x308   : > { %v1475_v59 = vmul.f32 1.442695, %v1474_v55  ;;  %v1398_v8 = vadd.f32 %v1397_v6, %v1317_v62 }
 0x309   : > { %1752 = vpow2.f32 %v1436_v57  ;;  %v1432_v60 = vadd.f32 %v1424_v54, %v1378_v58 }
 0x30a   : > { %1754 = vpow2.f32 %v1475_v59  ;;  %v1433_v14 = vadd.f32 %v1425_v9, %v1398_v8 }
 0x30b   : > { %v1454_v61 = vsub.f32 0.0, %v1432_v60 }
 0x30d   : > { %v1455_v63 = vmul.f32 1.442695, %v1454_v61 }
 0x30f   : > { %v1753_v0 = vpop.eup %1752  ;;  %1756 = vpow2.f32 %v1455_v63 }
 0x310   : > { %v1755_v1 = vpop.eup %1754  ;;  %v1438_v2 = vadd.f32 1.0, %v1753_v0 }
 0x311   : > { %v1477_v3 = vadd.f32 1.0, %v1755_v1 }
 0x312   : > { %1758 = vrcp.f32 %v1438_v2  ;;  %v1450_v17 = vand.u32 2147483648, %v1438_v2  ;;  %vm1444_vm10 = vweird.f32 %v1438_v2  ;;  %v1448_v19 = vand.u32 2147483647, %v1438_v2 }
 0x313   : > { %1760 = vrcp.f32 %v1477_v3  ;;  %v1489_v38 = vand.u32 2147483648, %v1477_v3  ;;  %vm1483_vm2 = vweird.f32 %v1477_v3  ;;  %v1487_v40 = vand.u32 2147483647, %v1477_v3 }
 0x314   : > { %v1451_v25 = vor.u32 1.1754944e-38, %v1450_v17  ;;  %vm1449_vm14 = vcmp.eq.f32.partialorder %v1448_v19, 8.507059e+37 }
 0x315   : > { %v1757_v4 = vpop.eup %1756  ;;  %v1490_v42 = vor.u32 1.1754944e-38, %v1489_v38  ;;  %vm1488_vm4 = vcmp.eq.f32.partialorder %v1487_v40, 8.507059e+37 }
 0x316   : > { %v1457_v5 = vadd.f32 1.0, %v1757_v4 }
 0x318   : > { %v1759_v7 = vpop.eup %1758  ;;  %1762 = vrcp.f32 %v1457_v5  ;;  %v1469_v20 = vand.u32 2147483648, %v1457_v5  ;;  %v1467_v23 = vand.u32 2147483647, %v1457_v5  ;;  %vm1463_vm13 = vweird.f32 %v1457_v5 }
 0x319   : > { %v1440_v39 = vmul.f32 %v1759_v7, %v1438_v2  ;;  %v1761_v11 = vpop.eup %1760  ;;  %vm1445_vm9 = vweird.f32 %v1759_v7  ;;  %1764 = vtanh.f32 %v1433_v14 }
 0x31a   : > { %v1479_v16 = vmul.f32 %v1761_v11, %v1477_v3  ;;  %vm1446_vm11 = vmor %vm1444_vm10, %vm1445_vm9  ;;  %v1470_v27 = vor.u32 1.1754944e-38, %v1469_v20  ;;  %vm1468_vm0 = vcmp.eq.f32.partialorder %v1467_v23, 8.507059e+37  ;;  %vm1484_vm1 = vweird.f32 %v1761_v11 }
 0x31b   : > { %v1441_v10 = vsub.f32 1.0, %v1440_v39  ;;  %vm1485_vm3 = vmor %vm1483_vm2, %vm1484_vm1 }
 0x31c   : > { %v1480_v24 = vsub.f32 1.0, %v1479_v16 }
 0x31d   : > { %v1442_v12 = vmul.f32 %v1759_v7, %v1441_v10 }
 0x31e   : > { %v1763_v13 = vpop.eup %1762  ;;  %v1481_v32 = vmul.f32 %v1761_v11, %v1480_v24 }
 0x31f   : > { %v1459_v47 = vmul.f32 %v1763_v13, %v1457_v5  ;;  %v1443_v15 = vadd.f32 %v1759_v7, %v1442_v12  ;;  %vm1464_vm12 = vweird.f32 %v1763_v13  ;;  %v1765_v31 = vpop.eup %1764 }
 0x320   : > { %vm1465_vm15 = vmor %vm1463_vm13, %vm1464_vm12  ;;  %v1482_v37 = vadd.f32 %v1761_v11, %v1481_v32 }
 0x321   : > { %v1460_v18 = vsub.f32 1.0, %v1459_v47  ;;  %v1447_v22 = vsel %vm1446_vm11, %v1759_v7, %v1443_v15 }
 0x322   : > { %v1452_v29 = vsel %vm1449_vm14, %v1451_v25, %v1447_v22  ;;  %v1486_v41 = vsel %vm1485_vm3, %v1761_v11, %v1482_v37 }
 0x323   : > { %v1461_v21 = vmul.f32 %v1763_v13, %v1460_v18  ;;  %v1494_v35 = vmul.f32 %v1765_v31, %v1452_v29  ;;  %v1491_v44 = vsel %vm1488_vm4, %v1490_v42, %v1486_v41 }
 0x325   : > { %v1462_v26 = vadd.f32 %v1763_v13, %v1461_v21 }
 0x327   : > { %v1466_v30 = vsel %vm1465_vm15, %v1763_v13, %v1462_v26 }
 0x328   : > { %v1471_v33 = vsel %vm1468_vm0, %v1470_v27, %v1466_v30 }
 0x329   : > { %v1493_v34 = vmul.f32 %v1471_v33, %v1129_v28 }
 0x32b   : > { %v1495_v36 = vadd.f32 %v1494_v35, %v1493_v34 }
 0x32d   : > { %1766 = vtanh.f32 %v1495_v36  ;;  %1499 = vst [vmem:[#allocation3 + $0x10] sm:$0xff] %v1495_v36 }
 0x332   : > { %1503 = sbr.rel (%p1651_p8) target bundleno = 984 (0x3d8), region = 72 }
 0x333   : > { %v1767_v43 = vpop.eup %1766 }
 0x334   : > { %v1497_v45 = vmul.f32 %v1767_v43, %v1491_v44 }
 0x336   : > { %1498 = vst [vmem:[#allocation2 + $0x8] sm:$0xff] %v1497_v45 }
 0x337   : > { %v1519_v46 = vld [vmem:[#allocation10 + $0x78] sm:$0xff]  ;;  %v1518_v48 = vld [vmem:[#allocation10 + $0x70] sm:$0xff]  ;;  %v1517_v49 = vld [vmem:[#allocation10 + $0x68] sm:$0xff] }
 0x338   : > { %1524 = vmatpush.msra.mxu0 %v1519_v46  ;;  %v1516_v50 = vld [vmem:[#allocation10 + $0x60] sm:$0xff]  ;;  %v1515_v51 = vld [vmem:[#allocation10 + $0x58] sm:$0xff]  ;;  %v1514_v52 = vld [vmem:[#allocation10 + $0x50] sm:$0xff] }
 0x339   : > { %v1513_v53 = vld [vmem:[#allocation10 + $0x48] sm:$0xff]  ;;  %v1512_v54 = vld [vmem:[#allocation10 + $0x40] sm:$0xff]  ;;  %v1511_v55 = vld [vmem:[#allocation10 + $0x38] sm:$0xff] }
 0x33a   : > { %1525 = vmatpush.msra.mxu0 %v1518_v48  ;;  %v1510_v56 = vld [vmem:[#allocation10 + $0x30] sm:$0xff]  ;;  %v1509_v57 = vld [vmem:[#allocation10 + $0x28] sm:$0xff]  ;;  %v1508_v58 = vld [vmem:[#allocation10 + $0x20] sm:$0xff] }
 0x33b   : > { %v1507_v59 = vld [vmem:[#allocation10 + $0x18] sm:$0xff]  ;;  %v1506_v60 = vld [vmem:[#allocation10 + $0x10] sm:$0xff]  ;;  %v1505_v61 = vld [vmem:[#allocation10 + $0x8] sm:$0xff] }
 0x33c   : > { %1526 = vmatpush.msra.mxu0 %v1517_v49  ;;  %v1504_v62 = vld [vmem:[#allocation10] sm:$0xff]  ;;  %v1768_v63 = vld [vmem:[%s2124_s6] ss:$0 sm:$0xff] }
 0x33e   : > { %1527 = vmatpush.msra.mxu0 %v1516_v50 }
 0x340   : > { %1528 = vmatpush.msra.mxu0 %v1515_v51 }
 0x342   : > { %1529 = vmatpush.msra.mxu0 %v1514_v52 }
 0x344   : > { %1530 = vmatpush.msra.mxu0 %v1513_v53 }
 0x346   : > { %1531 = vmatpush.msra.mxu0 %v1512_v54 }
 0x348   : > { %1532 = vmatpush.msra.mxu0 %v1511_v55 }
 0x34a   : > { %1533 = vmatpush.msra.mxu0 %v1510_v56 }
 0x34c   : > { %1534 = vmatpush.msra.mxu0 %v1509_v57 }
 0x34e   : > { %1535 = vmatpush.msra.mxu0 %v1508_v58 }
 0x350   : > { %1536 = vmatpush.msra.mxu0 %v1507_v59 }
 0x352   : > { %1537 = vmatpush.msra.mxu0 %v1506_v60 }
 0x354   : > { %1538 = vmatpush.msra.mxu0 %v1505_v61 }
 0x356   : > { %1539 = vmatpush.msra.mxu0 %v1504_v62 }
 0x357   : > { %1540 = vmatmul.f32.vlgmr.msra.gmra.mxu0 %v1497_v45 }
 0x3d4   : > { %v1541_v0 = vpop.f32.mrf.mxu0 }
 0x3d5   : > { %v1542_v1 = vadd.f32 %v1768_v63, %v1541_v0 }
 0x3d7   : > { %1544 = vst [vmem:[#allocation12] sm:$0xff] %v1542_v1 }
 0x3d8 PF: > { %p1697_p9 = scmp.eq.s32.totalorder %s2002_s28, 7  ;;  %s1952_s21 = smov [#allocation12]  }
 0x3d9   : > { %s1551_s22 = sshll.u32 %s1952_s21, 4  ;;  %s1553_s26 = sshll.u32 %s2125_s7, 4  ;;  %s1552_s22 = int_to_ptr.vmem [resolvable:$true] %s1551_s22  ;;  %s1554_s26 = int_to_ptr.hbm [resolvable:$true] %s1553_s26 }
 0x3da   : > { %1673 = dma.vmem_to_hbm [thread:$0]  (%p1697_p9), %s1552_s22, 128, %s1554_s26, [#allocation6]  }
 0x3db   : > { %1934 = dma.done.wait (%p1697_p9), [#allocation6], 128  }
 0x3dc   : > { %1936 = vsyncadd (%p1697_p9), [#allocation6], 4294967168 }
 0x3dd PF: > { %s21_s24 = sadd.s32 1, %s1939_s24  }
 0x3de   : > { %p18_p10 = scmp.ge.s32.totalorder %s21_s24, 10  }
 0x3e0   :  { %20 = sbr.rel (!%p18_p10) target bundleno = 4 (0x4), region = 110 }
 0x3e5   :  { %1567 = vsyncpa [#allocation5], 1 }
 0x3e6   :  { %1569 = vsyncpa [#allocation5 + $0x1], 1 }
 0x3e7   :  { %1570 = vsyncpa [#allocation8], 1 }
 0x3e8   :  { %1571 = vsyncpa [#allocation11], 1 }
 0x3e9   :  { %1572 = vsyncpa [#allocation6], 1 }
 0x3ea   :  { %1574 = vsyncpa [#allocation6 + $0x1], 1 }

</bundles_post_ra>
